<compile_context>
chip_gen: v7x
topology: tpu7x:2x2x1
jax: 0.10.0
libtpu: 0.0.40
codegen_flags: <defaults>
</compile_context>

<pallas_src>
import functools

import jax
import jax.numpy as jnp
from jax.experimental import pallas as pl
from jax.experimental.pallas import tpu as pltpu

_LANE = 128
_SUBLANE = 8
_MIN_GRID_TILES = 8   # aim for at least this many batch tiles (2 TCs + pipeline)


def _round_up(n, m):
    return ((n + m - 1) // m) * m


def _cdiv(a, b):
    return (a + b - 1) // b


def _device_kind():
    try:
        return jax.devices()[0].device_kind.lower()
    except Exception:
        return ""


def _vmem_capacity_bytes():
    try:
        return int(pltpu.get_tpu_info().vmem_capacity_bytes)
    except Exception:
        return 64 * 1024 * 1024          # conservative (v7x-sized) fallback


def _mxu_lane_align():
    # v6e / v7x MXUs are 2x256x256 -> 256-aligned feature dims when the real
    # width is >= 128; v5e (4x128x128) keeps 128.
    kind = _device_kind()
    return 256 if ("v6" in kind or "v7" in kind) else 128


def _pad_feature_dim(d, mxu_align):
    if d >= _LANE and mxu_align > _LANE:
        return _round_up(d, mxu_align)
    return _round_up(d, _LANE)


def _default_tile_rows():
    # 128 MiB-VMEM parts (v5e/v6e) take bigger batch tiles; v7x (64 MiB) smaller.
    return 2048 if _vmem_capacity_bytes() >= 100 * 1024 * 1024 else 1024


def _choose_tile(n, tile_n):
    tile_n = max(_SUBLANE, _round_up(tile_n, _SUBLANE))
    # Keep >= _MIN_GRID_TILES grid steps when the batch allows it, so both v7x
    # TensorCores get work and the software pipeline has steps to overlap.
    tile = min(tile_n, _round_up(_cdiv(n, _MIN_GRID_TILES), _SUBLANE))
    return max(tile, _SUBLANE)


# -----------------------------------------------------------------------------
# One-time parameter preparation (hoisted OUT of the per-call jitted forward).
# -----------------------------------------------------------------------------
def prepare_mlp_params(params, matmul_dtype=jnp.bfloat16, mxu_align=None):
    """Pad + cast parameters once.

    params: flat [W0, b0, W1, b1, ...] with Wl [in_l, out_l] (PyTorch weight
    transposed to [in, out]) and bl [out_l] or [1, out_l].

    - weights are cast to `matmul_dtype` (bf16 is MXU-native on all TPU gens;
      accumulation stays f32 in-kernel),
    - feature dims are zero-padded to MXU-friendly widths (numerically exact:
      padded weight rows/cols and biases are zero, ReLU(0)=0),
    - the LAST bias stays unpadded so the kernel knows the true dim_out and
      writes only dim_out lanes back to HBM.
    """
    if mxu_align is None:
        mxu_align = _mxu_lane_align()
    num_layers = len(params) // 2
    prepared = []
    for l in range(num_layers):
        w = jnp.asarray(params[2 * l])
        b = jnp.asarray(params[2 * l + 1]).reshape(1, -1)
        d_i, d_o = w.shape
        d_ip = _pad_feature_dim(d_i, mxu_align)
        d_op = _pad_feature_dim(d_o, mxu_align)
        w_p = jnp.pad(w, ((0, d_ip - d_i), (0, d_op - d_o))).astype(matmul_dtype)
        if l == num_layers - 1:
            b_p = b.astype(jnp.float32)                       # unpadded: carries dim_out
        else:
            b_p = jnp.pad(b, ((0, 0), (0, d_op - d_o))).astype(jnp.float32)
        prepared.extend([w_p, b_p])
    return prepared


# -----------------------------------------------------------------------------
# Kernel
# -----------------------------------------------------------------------------
def _make_mlp_kernel(num_layers):
    """kernel(x_ref, w0, b0, ..., w_{L-1}, b_{L-1}, o_ref)."""

    def kernel(*refs):
        x_ref, o_ref = refs[0], refs[-1]
        prm = refs[1:-1]
        acts_dtype = prm[0].dtype          # matmul dtype (bf16 on v6e/v7x)
        k_pad = prm[0].shape[0]            # padded layer-0 contraction dim

        h = x_ref[...]
        k = h.shape[-1]
        if k_pad > k:
            # Lane-align the first contraction dim inside VMEM (the matching
            # weight rows are zero, so this is exact).  This replaces the old
            # HBM-side jnp.pad of x that inflated input DMA bytes ~32x.
            h = jnp.concatenate(
                [h, jnp.zeros((h.shape[0], k_pad - k), h.dtype)], axis=-1)

        for l in range(num_layers):
            w = prm[2 * l][...]
            b = prm[2 * l + 1][...].astype(jnp.float32)
            # bf16 (or f32) MXU matmul with f32 accumulation.
            z = jnp.dot(h.astype(w.dtype), w, preferred_element_type=jnp.float32)
            if l != num_layers - 1:
                # BasicBlock: Linear + ReLU.  Bias/ReLU in f32 on the VPU
                # (v5e-safe); carry the activation in the matmul dtype to
                # halve vreg/VMEM pressure between layers.
                h = jnp.maximum(z + b, 0.0).astype(acts_dtype)
            else:
                # Final bare Linear: drop the (zero) padded output lanes and
                # store only the true dim_out lanes to HBM.
                h = z[:, : o_ref.shape[-1]] + b
        o_ref[...] = h.astype(o_ref.dtype)

    return kernel


# -----------------------------------------------------------------------------
# Wrapper
# -----------------------------------------------------------------------------
@functools.partial(
    jax.jit,
    static_argnames=("tile_n", "single_buffer_params", "pad_input_in_hbm"),
)
def mlp_pallas(x, prepared_params, tile_n=None, single_buffer_params=True,
               pad_input_in_hbm=False):
    """Fused MLP forward.

    x:               [N, dim_in]   (NOT lane-padded; K alignment happens in VMEM)
    prepared_params: output of prepare_mlp_params()
    Returns [N, dim_out].
    """
    params = list(prepared_params)
    num_layers = len(params) // 2
    N, dim_in = x.shape
    dim_out = params[-1].shape[-1]          # last bias is unpadded -> true dim_out
    k_pad = params[0].shape[0]              # padded layer-0 contraction dim

    if tile_n is None:
        tile_n = _default_tile_rows()
    tile = _choose_tile(N, tile_n)
    n_pad = _round_up(N, tile)

    # Row padding only when ragged (small); optional HBM lane-pad is a
    # portability fallback, not the default path.
    lane_pad = (k_pad - dim_in) if pad_input_in_hbm else 0
    row_pad = n_pad - N
    x_in = jnp.pad(x, ((0, row_pad), (0, lane_pad))) if (row_pad or lane_pad) else x
    x_block_w = dim_in + lane_pad
    grid = (n_pad // tile,)

    # --- BlockSpecs: batch-tiled x / out; grid-invariant (VMEM-resident) params.
    param_pipeline = pl.Buffered(1) if single_buffer_params else None
    in_specs = [pl.BlockSpec((tile, x_block_w), lambda i: (i, 0))]
    for p in params:
        in_specs.append(
            pl.BlockSpec(p.shape, lambda i: (0, 0), pipeline_mode=param_pipeline))
    out_spec = pl.BlockSpec((tile, dim_out), lambda i: (i, 0))

    # --- Advisory cost estimate.
    flops = sum(2 * n_pad * int(params[2 * l].shape[0]) * int(params[2 * l].shape[1])
                for l in range(num_layers))
    param_bytes = sum(int(p.size) * p.dtype.itemsize for p in params)
    bytes_accessed = (int(x.size) * x.dtype.itemsize
                      + n_pad * dim_out * x.dtype.itemsize
                      + param_bytes)
    cost = pl.CostEstimate(flops=int(flops), transcendentals=0,
                           bytes_accessed=int(bytes_accessed))

    # --- VMEM budget: params (single- or double-buffered) + double-buffered
    #     x/out tiles + activation working set, clamped below physical VMEM.
    widest = max(max(int(p.shape[-1]) for p in params[0::2]), k_pad)
    io_bytes = 2 * tile * (x_block_w + dim_out) * x.dtype.itemsize
    act_bytes = 6 * tile * widest * 4
    need = (1 if single_buffer_params else 2) * param_bytes + io_bytes + act_bytes
    cap = _vmem_capacity_bytes()
    vmem_limit = int(min(int(cap * 0.8), max(32 * 1024 * 1024, 2 * need)))

    out = pl.pallas_call(
        _make_mlp_kernel(num_layers),
        out_shape=jax.ShapeDtypeStruct((n_pad, dim_out), x.dtype),
        grid_spec=pltpu.PrefetchScalarGridSpec(
            num_scalar_prefetch=0,
            grid=grid,
            in_specs=in_specs,
            out_specs=out_spec,
        ),
        compiler_params=pltpu.CompilerParams(
            dimension_semantics=("parallel",),   # shard batch tiles across TCs
            vmem_limit_bytes=vmem_limit,
        ),
        cost_estimate=cost,
    )(x_in, *params)

    return out if row_pad == 0 else out[:N]


# -----------------------------------------------------------------------------
# Reference / init helpers
# -----------------------------------------------------------------------------
def init_mlp_params(key, dim_in, dim_out, dim_hidden, num_layers, dtype=jnp.float32):
    """Synthetic init matching the PyTorch module's layer shapes."""
    params = []
    for l in range(num_layers):
        d_i = dim_in if l == 0 else dim_hidden
        d_o = dim_out if l == num_layers - 1 else dim_hidden
        key, kw = jax.random.split(key)
        limit = jnp.sqrt(2.0) * jnp.sqrt(6.0 / (d_i + d_o))   # xavier_uniform, relu gain
        w = jax.random.uniform(kw, (d_i, d_o), dtype=dtype, minval=-limit, maxval=limit)
        b = jnp.zeros((1, d_o), dtype=dtype)
        params.extend([w, b])
    return params


def mlp_reference(x, params, matmul_dtype=jnp.float32):
    """Pure-JAX reference mirroring the kernel math (matmul dtype + f32 accumulate)."""
    num_layers = len(params) // 2
    h = x
    for l in range(num_layers):
        w = params[2 * l].astype(matmul_dtype)
        b = params[2 * l + 1].reshape(1, -1).astype(jnp.float32)
        z = jnp.dot(h.astype(matmul_dtype), w, preferred_element_type=jnp.float32) + b
        h = jnp.maximum(z, 0.0) if l != num_layers - 1 else z
    return h


if __name__ == "__main__":
    # Small NeRF-style MLP head: dim_in=4, hidden=32, out=3, 3 layers.
    N, dim_in, dim_hidden, dim_out, num_layers = 256, 4, 32, 3, 3

    key = jax.random.PRNGKey(0)
    key, kx = jax.random.split(key)
    x = jax.random.normal(kx, (N, dim_in), dtype=jnp.float32)
    params = init_mlp_params(key, dim_in, dim_out, dim_hidden, num_layers)

    # One-time parameter prep (hoisted out of the per-call forward).
    prep_f32 = prepare_mlp_params(params, matmul_dtype=jnp.float32)
    prep_bf16 = prepare_mlp_params(params, matmul_dtype=jnp.bfloat16)

    def run(xv, prep, cfg):
        return jax.block_until_ready(mlp_pallas(xv, prep, tile_n=64, **cfg))

    # Preferred config first (single-buffered params, no HBM lane-pad of x);
    # fall back if this JAX/Mosaic build rejects an optional feature.
    configs = [
        dict(single_buffer_params=True, pad_input_in_hbm=False),
        dict(single_buffer_params=False, pad_input_in_hbm=False),
        dict(single_buffer_params=False, pad_input_in_hbm=True),
    ]
    cfg, out_f32, last_err = None, None, None
    for c in configs:
        try:
            out_f32 = run(x, prep_f32, c)
            cfg = c
            break
        except Exception as e:        # portability fallback only
            last_err = e
    if cfg is None:
        raise last_err

    # f32-matmul path vs f32 reference (tight tolerance).
    ref_f32 = mlp_reference(x, params, matmul_dtype=jnp.float32)
    assert out_f32.shape == (N, dim_out)
    assert jnp.allclose(out_f32, ref_f32, atol=1e-4, rtol=1e-4)

    # bf16-matmul path (MXU-native) vs a bf16-emulating reference.
    out_bf16 = run(x, prep_bf16, cfg)
    ref_bf16 = mlp_reference(x, params, matmul_dtype=jnp.bfloat16)
    assert jnp.allclose(out_bf16, ref_bf16, atol=2e-3, rtol=2e-3)

    # Ragged batch: exercises the (small) row-padding path.
    x2 = x[:50]
    out2 = run(x2, prep_bf16, cfg)
    assert out2.shape == (50, dim_out)
    assert jnp.allclose(out2, ref_bf16[:50], atol=2e-3, rtol=2e-3)

    print("KERNEL_OK")
</pallas_src>

<mosaic_0001>
module attributes {stable_mosaic.version = 11 : i64} {
  func.func @kernel(%arg0: i32, %arg1: memref<32x4xf32, #tpu.memory_space<vmem>>, %arg2: memref<128x128xf32, #tpu.memory_space<vmem>>, %arg3: memref<1x128xf32, #tpu.memory_space<vmem>>, %arg4: memref<128x128xf32, #tpu.memory_space<vmem>>, %arg5: memref<1x128xf32, #tpu.memory_space<vmem>>, %arg6: memref<128x128xf32, #tpu.memory_space<vmem>>, %arg7: memref<1x3xf32, #tpu.memory_space<vmem>>, %arg8: memref<32x3xf32, #tpu.memory_space<vmem>>) attributes {dimension_semantics = [#tpu.dimension_semantics<parallel>], iteration_bounds = array<i64: 8>, scalar_prefetch = 0 : i64, scratch_operands = 0 : i64, tpu.core_type = #tpu.core_type<tc>, window_params = [{transform_indices = @transform_0, window_bounds = array<i64: 32, 4>}, {pipeline_mode = #tpu.pipeline_mode<synchronous>, transform_indices = @transform_1, window_bounds = array<i64: 128, 128>}, {pipeline_mode = #tpu.pipeline_mode<synchronous>, transform_indices = @transform_2, window_bounds = array<i64: 1, 128>}, {pipeline_mode = #tpu.pipeline_mode<synchronous>, transform_indices = @transform_3, window_bounds = array<i64: 128, 128>}, {pipeline_mode = #tpu.pipeline_mode<synchronous>, transform_indices = @transform_4, window_bounds = array<i64: 1, 128>}, {pipeline_mode = #tpu.pipeline_mode<synchronous>, transform_indices = @transform_5, window_bounds = array<i64: 128, 128>}, {pipeline_mode = #tpu.pipeline_mode<synchronous>, transform_indices = @transform_6, window_bounds = array<i64: 1, 3>}, {transform_indices = @transform_7, window_bounds = array<i64: 32, 3>}]} {
    %c0 = arith.constant 0 : index
    %c0_0 = arith.constant 0 : index
    %0 = vector.load %arg1[%c0, %c0_0] : memref<32x4xf32, #tpu.memory_space<vmem>>, vector<32x4xf32>
    %cst = arith.constant 0.000000e+00 : f32
    %1 = vector.broadcast %cst : f32 to vector<32x124xf32>
    %2 = tpu.concatenate %0, %1 in 1 : vector<32x4xf32>, vector<32x124xf32> -> vector<32x128xf32>
    %c0_1 = arith.constant 0 : index
    %c0_2 = arith.constant 0 : index
    %3 = vector.load %arg2[%c0_1, %c0_2] : memref<128x128xf32, #tpu.memory_space<vmem>>, vector<128x128xf32>
    %c0_3 = arith.constant 0 : index
    %c0_4 = arith.constant 0 : index
    %4 = vector.load %arg3[%c0_3, %c0_4] : memref<1x128xf32, #tpu.memory_space<vmem>>, vector<1x128xf32>
    %cst_5 = arith.constant dense<0.000000e+00> : vector<32x128xf32>
    %5 = tpu.matmul %2, %3, %cst_5 {dimension_numbers = #tpu.dot_dimension_numbers<[1], [0], [0], [1], [0, 0, 1, 1], [], []>} : vector<32x128xf32>, vector<128x128xf32>, vector<32x128xf32> -> vector<32x128xf32>
    %6 = vector.broadcast %4 : vector<1x128xf32> to vector<32x128xf32>
    %7 = arith.addf %5, %6 : vector<32x128xf32>
    %cst_6 = arith.constant 0.000000e+00 : f32
    %8 = vector.broadcast %cst_6 : f32 to vector<32x128xf32>
    %9 = arith.maximumf %7, %8 : vector<32x128xf32>
    %c0_7 = arith.constant 0 : index
    %c0_8 = arith.constant 0 : index
    %10 = vector.load %arg4[%c0_7, %c0_8] : memref<128x128xf32, #tpu.memory_space<vmem>>, vector<128x128xf32>
    %c0_9 = arith.constant 0 : index
    %c0_10 = arith.constant 0 : index
    %11 = vector.load %arg5[%c0_9, %c0_10] : memref<1x128xf32, #tpu.memory_space<vmem>>, vector<1x128xf32>
    %cst_11 = arith.constant dense<0.000000e+00> : vector<32x128xf32>
    %12 = tpu.matmul %9, %10, %cst_11 {dimension_numbers = #tpu.dot_dimension_numbers<[1], [0], [0], [1], [0, 0, 1, 1], [], []>} : vector<32x128xf32>, vector<128x128xf32>, vector<32x128xf32> -> vector<32x128xf32>
    %13 = vector.broadcast %11 : vector<1x128xf32> to vector<32x128xf32>
    %14 = arith.addf %12, %13 : vector<32x128xf32>
    %cst_12 = arith.constant 0.000000e+00 : f32
    %15 = vector.broadcast %cst_12 : f32 to vector<32x128xf32>
    %16 = arith.maximumf %14, %15 : vector<32x128xf32>
    %c0_13 = arith.constant 0 : index
    %c0_14 = arith.constant 0 : index
    %17 = vector.load %arg6[%c0_13, %c0_14] : memref<128x128xf32, #tpu.memory_space<vmem>>, vector<128x128xf32>
    %c0_15 = arith.constant 0 : index
    %c0_16 = arith.constant 0 : index
    %18 = vector.load %arg7[%c0_15, %c0_16] : memref<1x3xf32, #tpu.memory_space<vmem>>, vector<1x3xf32>
    %cst_17 = arith.constant dense<0.000000e+00> : vector<32x128xf32>
    %19 = tpu.matmul %16, %17, %cst_17 {dimension_numbers = #tpu.dot_dimension_numbers<[1], [0], [0], [1], [0, 0, 1, 1], [], []>} : vector<32x128xf32>, vector<128x128xf32>, vector<32x128xf32> -> vector<32x128xf32>
    %20 = vector.extract_strided_slice %19 {offsets = [0, 0], sizes = [32, 3], strides = [1, 1]} : vector<32x128xf32> to vector<32x3xf32>
    %21 = vector.broadcast %18 : vector<1x3xf32> to vector<32x3xf32>
    %22 = arith.addf %20, %21 : vector<32x3xf32>
    %c0_18 = arith.constant 0 : index
    %c0_19 = arith.constant 0 : index
    %23 = vector.load %arg8[%c0_18, %c0_19] : memref<32x3xf32, #tpu.memory_space<vmem>>, vector<32x3xf32>
    tpu.vector_store %arg8[%c0_18, %c0_19], %22 {strides = array<i32>} : memref<32x3xf32, #tpu.memory_space<vmem>>, vector<32x3xf32>,
    return
  }
  func.func @transform_0(%arg0: i32) -> (i32, i32) {
    %c0_i32 = arith.constant 0 : i32
    %c0_i32_0 = arith.constant 0 : i32
    return %arg0, %c0_i32 : i32, i32
  }
  func.func @transform_1(%arg0: i32) -> (i32, i32) {
    %c0_i32 = arith.constant 0 : i32
    %c0_i32_0 = arith.constant 0 : i32
    %c0_i32_1 = arith.constant 0 : i32
    return %c0_i32, %c0_i32_0 : i32, i32
  }
  func.func @transform_2(%arg0: i32) -> (i32, i32) {
    %c0_i32 = arith.constant 0 : i32
    %c0_i32_0 = arith.constant 0 : i32
    %c0_i32_1 = arith.constant 0 : i32
    return %c0_i32, %c0_i32_0 : i32, i32
  }
  func.func @transform_3(%arg0: i32) -> (i32, i32) {
    %c0_i32 = arith.constant 0 : i32
    %c0_i32_0 = arith.constant 0 : i32
    %c0_i32_1 = arith.constant 0 : i32
    return %c0_i32, %c0_i32_0 : i32, i32
  }
  func.func @transform_4(%arg0: i32) -> (i32, i32) {
    %c0_i32 = arith.constant 0 : i32
    %c0_i32_0 = arith.constant 0 : i32
    %c0_i32_1 = arith.constant 0 : i32
    return %c0_i32, %c0_i32_0 : i32, i32
  }
  func.func @transform_5(%arg0: i32) -> (i32, i32) {
    %c0_i32 = arith.constant 0 : i32
    %c0_i32_0 = arith.constant 0 : i32
    %c0_i32_1 = arith.constant 0 : i32
    return %c0_i32, %c0_i32_0 : i32, i32
  }
  func.func @transform_6(%arg0: i32) -> (i32, i32) {
    %c0_i32 = arith.constant 0 : i32
    %c0_i32_0 = arith.constant 0 : i32
    %c0_i32_1 = arith.constant 0 : i32
    return %c0_i32, %c0_i32_0 : i32, i32
  }
  func.func @transform_7(%arg0: i32) -> (i32, i32) {
    %c0_i32 = arith.constant 0 : i32
    %c0_i32_0 = arith.constant 0 : i32
    return %arg0, %c0_i32 : i32, i32
  }
}

module attributes {stable_mosaic.version = 11 : i64} {
  func.func @kernel(%arg0: i32, %arg1: memref<32x4xf32, #tpu.memory_space<vmem>>, %arg2: memref<128x128xf32, #tpu.memory_space<vmem>>, %arg3: memref<1x128xf32, #tpu.memory_space<vmem>>, %arg4: memref<128x128xf32, #tpu.memory_space<vmem>>, %arg5: memref<1x128xf32, #tpu.memory_space<vmem>>, %arg6: memref<128x128xf32, #tpu.memory_space<vmem>>, %arg7: memref<1x3xf32, #tpu.memory_space<vmem>>, %arg8: memref<32x3xf32, #tpu.memory_space<vmem>>) attributes {dimension_semantics = [#tpu.dimension_semantics<parallel>], iteration_bounds = array<i64: 8>, scalar_prefetch = 0 : i64, scratch_operands = 0 : i64, tpu.core_type = #tpu.core_type<tc>, window_params = [{transform_indices = @transform_0, window_bounds = array<i64: 32, 4>}, {pipeline_mode = #tpu.pipeline_mode<synchronous>, transform_indices = @transform_1, window_bounds = array<i64: 128, 128>}, {pipeline_mode = #tpu.pipeline_mode<synchronous>, transform_indices = @transform_2, window_bounds = array<i64: 1, 128>}, {pipeline_mode = #tpu.pipeline_mode<synchronous>, transform_indices = @transform_3, window_bounds = array<i64: 128, 128>}, {pipeline_mode = #tpu.pipeline_mode<synchronous>, transform_indices = @transform_4, window_bounds = array<i64: 1, 128>}, {pipeline_mode = #tpu.pipeline_mode<synchronous>, transform_indices = @transform_5, window_bounds = array<i64: 128, 128>}, {pipeline_mode = #tpu.pipeline_mode<synchronous>, transform_indices = @transform_6, window_bounds = array<i64: 1, 3>}, {transform_indices = @transform_7, window_bounds = array<i64: 32, 3>}]} {
    %c0 = arith.constant 0 : index
    %c0_0 = arith.constant 0 : index
    %0 = vector.load %arg1[%c0, %c0_0] : memref<32x4xf32, #tpu.memory_space<vmem>>, vector<32x4xf32>
    %cst = arith.constant 0.000000e+00 : f32
    %1 = vector.broadcast %cst : f32 to vector<32x124xf32>
    %2 = tpu.concatenate %0, %1 in 1 : vector<32x4xf32>, vector<32x124xf32> -> vector<32x128xf32>
    %c0_1 = arith.constant 0 : index
    %c0_2 = arith.constant 0 : index
    %3 = vector.load %arg2[%c0_1, %c0_2] : memref<128x128xf32, #tpu.memory_space<vmem>>, vector<128x128xf32>
    %c0_3 = arith.constant 0 : index
    %c0_4 = arith.constant 0 : index
    %4 = vector.load %arg3[%c0_3, %c0_4] : memref<1x128xf32, #tpu.memory_space<vmem>>, vector<1x128xf32>
    %cst_5 = arith.constant dense<0.000000e+00> : vector<32x128xf32>
    %5 = tpu.matmul %2, %3, %cst_5 {dimension_numbers = #tpu.dot_dimension_numbers<[1], [0], [0], [1], [0, 0, 1, 1], [], []>} : vector<32x128xf32>, vector<128x128xf32>, vector<32x128xf32> -> vector<32x128xf32>
    %6 = vector.broadcast %4 : vector<1x128xf32> to vector<32x128xf32>
    %7 = arith.addf %5, %6 : vector<32x128xf32>
    %cst_6 = arith.constant 0.000000e+00 : f32
    %8 = vector.broadcast %cst_6 : f32 to vector<32x128xf32>
    %9 = arith.maximumf %7, %8 : vector<32x128xf32>
    %c0_7 = arith.constant 0 : index
    %c0_8 = arith.constant 0 : index
    %10 = vector.load %arg4[%c0_7, %c0_8] : memref<128x128xf32, #tpu.memory_space<vmem>>, vector<128x128xf32>
    %c0_9 = arith.constant 0 : index
    %c0_10 = arith.constant 0 : index
    %11 = vector.load %arg5[%c0_9, %c0_10] : memref<1x128xf32, #tpu.memory_space<vmem>>, vector<1x128xf32>
    %cst_11 = arith.constant dense<0.000000e+00> : vector<32x128xf32>
    %12 = tpu.matmul %9, %10, %cst_11 {dimension_numbers = #tpu.dot_dimension_numbers<[1], [0], [0], [1], [0, 0, 1, 1], [], []>} : vector<32x128xf32>, vector<128x128xf32>, vector<32x128xf32> -> vector<32x128xf32>
    %13 = vector.broadcast %11 : vector<1x128xf32> to vector<32x128xf32>
    %14 = arith.addf %12, %13 : vector<32x128xf32>
    %cst_12 = arith.constant 0.000000e+00 : f32
    %15 = vector.broadcast %cst_12 : f32 to vector<32x128xf32>
    %16 = arith.maximumf %14, %15 : vector<32x128xf32>
    %c0_13 = arith.constant 0 : index
    %c0_14 = arith.constant 0 : index
    %17 = vector.load %arg6[%c0_13, %c0_14] : memref<128x128xf32, #tpu.memory_space<vmem>>, vector<128x128xf32>
    %c0_15 = arith.constant 0 : index
    %c0_16 = arith.constant 0 : index
    %18 = vector.load %arg7[%c0_15, %c0_16] : memref<1x3xf32, #tpu.memory_space<vmem>>, vector<1x3xf32>
    %cst_17 = arith.constant dense<0.000000e+00> : vector<32x128xf32>
    %19 = tpu.matmul %16, %17, %cst_17 {dimension_numbers = #tpu.dot_dimension_numbers<[1], [0], [0], [1], [0, 0, 1, 1], [], []>} : vector<32x128xf32>, vector<128x128xf32>, vector<32x128xf32> -> vector<32x128xf32>
    %20 = vector.extract_strided_slice %19 {offsets = [0, 0], sizes = [32, 3], strides = [1, 1]} : vector<32x128xf32> to vector<32x3xf32>
    %21 = vector.broadcast %18 : vector<1x3xf32> to vector<32x3xf32>
    %22 = arith.addf %20, %21 : vector<32x3xf32>
    %c0_18 = arith.constant 0 : index
    %c0_19 = arith.constant 0 : index
    %23 = vector.load %arg8[%c0_18, %c0_19] : memref<32x3xf32, #tpu.memory_space<vmem>>, vector<32x3xf32>
    tpu.vector_store %arg8[%c0_18, %c0_19], %22 {strides = array<i32>} : memref<32x3xf32, #tpu.memory_space<vmem>>, vector<32x3xf32>,
    return
  }
  func.func @transform_0(%arg0: i32) -> (i32, i32) {
    %c0_i32 = arith.constant 0 : i32
    %c0_i32_0 = arith.constant 0 : i32
    return %arg0, %c0_i32 : i32, i32
  }
  func.func @transform_1(%arg0: i32) -> (i32, i32) {
    %c0_i32 = arith.constant 0 : i32
    %c0_i32_0 = arith.constant 0 : i32
    %c0_i32_1 = arith.constant 0 : i32
    return %c0_i32, %c0_i32_0 : i32, i32
  }
  func.func @transform_2(%arg0: i32) -> (i32, i32) {
    %c0_i32 = arith.constant 0 : i32
    %c0_i32_0 = arith.constant 0 : i32
    %c0_i32_1 = arith.constant 0 : i32
    return %c0_i32, %c0_i32_0 : i32, i32
  }
  func.func @transform_3(%arg0: i32) -> (i32, i32) {
    %c0_i32 = arith.constant 0 : i32
    %c0_i32_0 = arith.constant 0 : i32
    %c0_i32_1 = arith.constant 0 : i32
    return %c0_i32, %c0_i32_0 : i32, i32
  }
  func.func @transform_4(%arg0: i32) -> (i32, i32) {
    %c0_i32 = arith.constant 0 : i32
    %c0_i32_0 = arith.constant 0 : i32
    %c0_i32_1 = arith.constant 0 : i32
    return %c0_i32, %c0_i32_0 : i32, i32
  }
  func.func @transform_5(%arg0: i32) -> (i32, i32) {
    %c0_i32 = arith.constant 0 : i32
    %c0_i32_0 = arith.constant 0 : i32
    %c0_i32_1 = arith.constant 0 : i32
    return %c0_i32, %c0_i32_0 : i32, i32
  }
  func.func @transform_6(%arg0: i32) -> (i32, i32) {
    %c0_i32 = arith.constant 0 : i32
    %c0_i32_0 = arith.constant 0 : i32
    %c0_i32_1 = arith.constant 0 : i32
    return %c0_i32, %c0_i32_0 : i32, i32
  }
  func.func @transform_7(%arg0: i32) -> (i32, i32) {
    %c0_i32 = arith.constant 0 : i32
    %c0_i32_0 = arith.constant 0 : i32
    return %arg0, %c0_i32 : i32, i32
  }
}

module attributes {stable_mosaic.version = 11 : i64} {
  func.func @kernel(%arg0: i32, %arg1: memref<32x128xf32, #tpu.memory_space<vmem>>, %arg2: memref<128x128xf32, #tpu.memory_space<vmem>>, %arg3: memref<1x128xf32, #tpu.memory_space<vmem>>, %arg4: memref<128x128xf32, #tpu.memory_space<vmem>>, %arg5: memref<1x128xf32, #tpu.memory_space<vmem>>, %arg6: memref<128x128xf32, #tpu.memory_space<vmem>>, %arg7: memref<1x3xf32, #tpu.memory_space<vmem>>, %arg8: memref<32x3xf32, #tpu.memory_space<vmem>>) attributes {dimension_semantics = [#tpu.dimension_semantics<parallel>], iteration_bounds = array<i64: 8>, scalar_prefetch = 0 : i64, scratch_operands = 0 : i64, tpu.core_type = #tpu.core_type<tc>, window_params = [{transform_indices = @transform_0, window_bounds = array<i64: 32, 128>}, {pipeline_mode = #tpu.pipeline_mode<synchronous>, transform_indices = @transform_1, window_bounds = array<i64: 128, 128>}, {pipeline_mode = #tpu.pipeline_mode<synchronous>, transform_indices = @transform_2, window_bounds = array<i64: 1, 128>}, {pipeline_mode = #tpu.pipeline_mode<synchronous>, transform_indices = @transform_3, window_bounds = array<i64: 128, 128>}, {pipeline_mode = #tpu.pipeline_mode<synchronous>, transform_indices = @transform_4, window_bounds = array<i64: 1, 128>}, {pipeline_mode = #tpu.pipeline_mode<synchronous>, transform_indices = @transform_5, window_bounds = array<i64: 128, 128>}, {pipeline_mode = #tpu.pipeline_mode<synchronous>, transform_indices = @transform_6, window_bounds = array<i64: 1, 3>}, {transform_indices = @transform_7, window_bounds = array<i64: 32, 3>}]} {
    %c0 = arith.constant 0 : index
    %c0_0 = arith.constant 0 : index
    %0 = vector.load %arg1[%c0, %c0_0] : memref<32x128xf32, #tpu.memory_space<vmem>>, vector<32x128xf32>
    %c0_1 = arith.constant 0 : index
    %c0_2 = arith.constant 0 : index
    %1 = vector.load %arg2[%c0_1, %c0_2] : memref<128x128xf32, #tpu.memory_space<vmem>>, vector<128x128xf32>
    %c0_3 = arith.constant 0 : index
    %c0_4 = arith.constant 0 : index
    %2 = vector.load %arg3[%c0_3, %c0_4] : memref<1x128xf32, #tpu.memory_space<vmem>>, vector<1x128xf32>
    %cst = arith.constant dense<0.000000e+00> : vector<32x128xf32>
    %3 = tpu.matmul %0, %1, %cst {dimension_numbers = #tpu.dot_dimension_numbers<[1], [0], [0], [1], [0, 0, 1, 1], [], []>} : vector<32x128xf32>, vector<128x128xf32>, vector<32x128xf32> -> vector<32x128xf32>
    %4 = vector.broadcast %2 : vector<1x128xf32> to vector<32x128xf32>
    %5 = arith.addf %3, %4 : vector<32x128xf32>
    %cst_5 = arith.constant 0.000000e+00 : f32
    %6 = vector.broadcast %cst_5 : f32 to vector<32x128xf32>
    %7 = arith.maximumf %5, %6 : vector<32x128xf32>
    %c0_6 = arith.constant 0 : index
    %c0_7 = arith.constant 0 : index
    %8 = vector.load %arg4[%c0_6, %c0_7] : memref<128x128xf32, #tpu.memory_space<vmem>>, vector<128x128xf32>
    %c0_8 = arith.constant 0 : index
    %c0_9 = arith.constant 0 : index
    %9 = vector.load %arg5[%c0_8, %c0_9] : memref<1x128xf32, #tpu.memory_space<vmem>>, vector<1x128xf32>
    %cst_10 = arith.constant dense<0.000000e+00> : vector<32x128xf32>
    %10 = tpu.matmul %7, %8, %cst_10 {dimension_numbers = #tpu.dot_dimension_numbers<[1], [0], [0], [1], [0, 0, 1, 1], [], []>} : vector<32x128xf32>, vector<128x128xf32>, vector<32x128xf32> -> vector<32x128xf32>
    %11 = vector.broadcast %9 : vector<1x128xf32> to vector<32x128xf32>
    %12 = arith.addf %10, %11 : vector<32x128xf32>
    %cst_11 = arith.constant 0.000000e+00 : f32
    %13 = vector.broadcast %cst_11 : f32 to vector<32x128xf32>
    %14 = arith.maximumf %12, %13 : vector<32x128xf32>
    %c0_12 = arith.constant 0 : index
    %c0_13 = arith.constant 0 : index
    %15 = vector.load %arg6[%c0_12, %c0_13] : memref<128x128xf32, #tpu.memory_space<vmem>>, vector<128x128xf32>
    %c0_14 = arith.constant 0 : index
    %c0_15 = arith.constant 0 : index
    %16 = vector.load %arg7[%c0_14, %c0_15] : memref<1x3xf32, #tpu.memory_space<vmem>>, vector<1x3xf32>
    %cst_16 = arith.constant dense<0.000000e+00> : vector<32x128xf32>
    %17 = tpu.matmul %14, %15, %cst_16 {dimension_numbers = #tpu.dot_dimension_numbers<[1], [0], [0], [1], [0, 0, 1, 1], [], []>} : vector<32x128xf32>, vector<128x128xf32>, vector<32x128xf32> -> vector<32x128xf32>
    %18 = vector.extract_strided_slice %17 {offsets = [0, 0], sizes = [32, 3], strides = [1, 1]} : vector<32x128xf32> to vector<32x3xf32>
    %19 = vector.broadcast %16 : vector<1x3xf32> to vector<32x3xf32>
    %20 = arith.addf %18, %19 : vector<32x3xf32>
    %c0_17 = arith.constant 0 : index
    %c0_18 = arith.constant 0 : index
    %21 = vector.load %arg8[%c0_17, %c0_18] : memref<32x3xf32, #tpu.memory_space<vmem>>, vector<32x3xf32>
    tpu.vector_store %arg8[%c0_17, %c0_18], %20 {strides = array<i32>} : memref<32x3xf32, #tpu.memory_space<vmem>>, vector<32x3xf32>,
    return
  }
  func.func @transform_0(%arg0: i32) -> (i32, i32) {
    %c0_i32 = arith.constant 0 : i32
    %c0_i32_0 = arith.constant 0 : i32
    return %arg0, %c0_i32 : i32, i32
  }
  func.func @transform_1(%arg0: i32) -> (i32, i32) {
    %c0_i32 = arith.constant 0 : i32
    %c0_i32_0 = arith.constant 0 : i32
    %c0_i32_1 = arith.constant 0 : i32
    return %c0_i32, %c0_i32_0 : i32, i32
  }
  func.func @transform_2(%arg0: i32) -> (i32, i32) {
    %c0_i32 = arith.constant 0 : i32
    %c0_i32_0 = arith.constant 0 : i32
    %c0_i32_1 = arith.constant 0 : i32
    return %c0_i32, %c0_i32_0 : i32, i32
  }
  func.func @transform_3(%arg0: i32) -> (i32, i32) {
    %c0_i32 = arith.constant 0 : i32
    %c0_i32_0 = arith.constant 0 : i32
    %c0_i32_1 = arith.constant 0 : i32
    return %c0_i32, %c0_i32_0 : i32, i32
  }
  func.func @transform_4(%arg0: i32) -> (i32, i32) {
    %c0_i32 = arith.constant 0 : i32
    %c0_i32_0 = arith.constant 0 : i32
    %c0_i32_1 = arith.constant 0 : i32
    return %c0_i32, %c0_i32_0 : i32, i32
  }
  func.func @transform_5(%arg0: i32) -> (i32, i32) {
    %c0_i32 = arith.constant 0 : i32
    %c0_i32_0 = arith.constant 0 : i32
    %c0_i32_1 = arith.constant 0 : i32
    return %c0_i32, %c0_i32_0 : i32, i32
  }
  func.func @transform_6(%arg0: i32) -> (i32, i32) {
    %c0_i32 = arith.constant 0 : i32
    %c0_i32_0 = arith.constant 0 : i32
    %c0_i32_1 = arith.constant 0 : i32
    return %c0_i32, %c0_i32_0 : i32, i32
  }
  func.func @transform_7(%arg0: i32) -> (i32, i32) {
    %c0_i32 = arith.constant 0 : i32
    %c0_i32_0 = arith.constant 0 : i32
    return %arg0, %c0_i32 : i32, i32
  }
}

</mosaic_0001>

<bundles_post_ra>
// kernel: mlp_pallas.1
= control target key start
LH: loop header
LB: loop body
LE: loop exit
PB: predicated region body
PF: predicated region fallthrough
CT: control target
= control target key end

     0   :  { %12 = vsyncpa [#allocation3], 0  ;;  %s1125_s24 = smov 0   ;;  %s1306_s0 = inlined_call_operand.vmem [shape: f32[256,4], index: 0, kind: input, shape index: {}]   ;;  %s1307_s1 = inlined_call_operand.vmem [shape: f32[128,128], index: 1, kind: input, shape index: {}]   ;;  %s1308_s2 = inlined_call_operand.vmem [shape: f32[1,128], index: 2, kind: input, shape index: {}]   ;;  %s1309_s3 = inlined_call_operand.vmem [shape: f32[128,128], index: 3, kind: input, shape index: {}]   ;;  %s1310_s4 = inlined_call_operand.vmem [shape: f32[1,128], index: 4, kind: input, shape index: {}]   ;;  %s1311_s5 = inlined_call_operand.hbm [shape: f32[128,128], index: 5, kind: input, shape index: {}]   ;;  %s1312_s6 = inlined_call_operand.vmem [shape: f32[1,3], index: 6, kind: input, shape index: {}]   ;;  %s1313_s7 = inlined_call_operand.vmem [shape: f32[256,3], index: 7, kind: output, shape index: {}]  }
   0x1 LB: > { %s715_s25 = sadd.s32 4294967295, %s1080_s24   ;;  %p717_p0 = scmp.ge.s32.totalorder %s1080_s24, 1  ;;  %s1080_s24 = sphi %s1125_s24, %s18_s24  }
   0x2   : > { %p201_p1 = scmp.lt.s32.totalorder %s1080_s24, 9  ;;  %s1082_s26 = smov [#allocation2]  }
   0x3   : > { %s225_s27 = sshll.u32 %s1082_s26, 4  ;;  %p1139_p3 = scmp.eq.s32.totalorder %s715_s25, 0  ;;  %s226_s27 = int_to_ptr.vmem [resolvable:$true] %s225_s27 }
   0x4   : > { %p1133_p2 = pnand %p717_p0, %p201_p1  ;;  %s1042_s10 = scalar_lea.hbm %s1311_s5, 2048 }
   0x5   : > { %s1318_s29 = scalar_select %p1139_p3, 1, 0 }
   0x6   : > { %s1317_s28 = scalar_select %p1133_p2, 1, 0 }
   0x7   : > { %p1025_p4 = pneg %p1133_p2  ;;  %p1043_p6 = scmp.ne.s32.totalorder %s1311_s5, %s1042_s10 }
   0x8   : > { %p1049_p10 = scmp.lt.u32.totalorder %s1042_s10, %s1311_s5 }
   0x9   : > { %p1147_p5 = pnand %p1139_p3, %p1025_p4 }
   0xb   : > { %p1044_p7 = pneg %p1147_p5 }
   0xd   : > { %p1045_p8 = pnand %p1044_p7, %p1043_p6 }
   0xf   : > { %p1046_p9 = pneg %p1045_p8 }
  0x11   : > { %p1051_p11 = pnand %p1049_p10, %p1046_p9 }
  0x13   : > { %1054 = shalt.err (!%p1051_p11)
}
  0x14   : > { %s1055_s15 = scalar_lea.vmem %s226_s27, 2048  ;;  %p1063_p1 = scmp.lt.s32.totalorder %s226_s27, %s226_s27 }
  0x15   : > { %p1056_p12 = scmp.ne.s32.totalorder %s226_s27, %s1055_s15  ;;  %p1064_p4 = scmp.lt.s32.totalorder %s1055_s15, %s1055_s15 }
  0x17   : > { %p1058_p13 = pnand %p1056_p12, %p1044_p7  ;;  %p1065_p3 = por %p1064_p4, %p1063_p1 }
  0x19   : > { %p1059_p0 = pneg %p1058_p13 }
  0x1b   : > { %p1066_p2 = pnand %p1065_p3, %p1059_p0 }
  0x1d   : > { %1069 = shalt.err (!%p1066_p2)
}
  0x1e   : > { %s1083_s16 = smov 128   ;;  %s1084_s17 = smov 8  }
  0x1f   : > { %1028 = dma.hbm_to_vmem [thread:$0]  (!%p1147_p5), %s1311_s5, 2048, %s226_s27, [#allocation3], %s1083_s16, %s1083_s16, %s1084_s17  }
  0x20   : > { %p1320_p6 = scmp.ne.s32.totalorder %s1317_s28, 0 }
  0x21   : > { %p1321_p8 = scmp.ne.s32.totalorder (!%p1320_p6), %s1318_s29, 0 }
  0x22   : > { %253 = sbr.rel (%p1320_p6) target bundleno = 733 (0x2dd), region = 48 }
  0x29   : > { %1075 = dma.done.wait (%p1321_p8), [#allocation3], 2048  }
  0x2a   : > { %1077 = vsyncadd (%p1321_p8), [#allocation3], 4294965248  ;;  %s722_s20 = sshll.u32 %s715_s25, 2  ;;  %v306_v0 = vld [vmem:[%s1307_s1] sm:$0xff]  ;;  %v307_v1 = vld [vmem:[%s1307_s1 + $0x8] sm:$0xff]  ;;  %vm301_vm0 = vcmask 31744  }
  0x2b   : > { %p286_p2 = scmp.lt.s32.totalorder %s722_s20, 31  ;;  %v308_v2 = vld [vmem:[%s1307_s1 + $0x10] sm:$0xff]  ;;  %v909_v3 = vpack.c.bf16 %v307_v1, %v306_v0  ;;  %v309_v4 = vld [vmem:[%s1307_s1 + $0x18] sm:$0xff]  ;;  %v310_v6 = vld [vmem:[%s1307_s1 + $0x20] sm:$0xff]  ;;  %vm642_vm1 = vcmask 23552  }
  0x2c   : > { %v913_v5 = vpack.c.bf16 %v309_v4, %v308_v2  ;;  %v311_v7 = vld [vmem:[%s1307_s1 + $0x28] sm:$0xff]  ;;  %v312_v10 = vld [vmem:[%s1307_s1 + $0x30] sm:$0xff]  ;;  %v313_v11 = vld [vmem:[%s1307_s1 + $0x38] sm:$0xff] }
  0x2d   : > { %s1323_s20 = smov (!%p286_p2, %s722_s20), 31  ;;  %910 = vmatprep.subr.bf16.mxu0 %v909_v3  ;;  %v917_v8 = vpack.c.bf16 %v311_v7, %v310_v6  ;;  %v418_v12 = vld [vmem:[%s1309_s3] sm:$0xff]  ;;  %v419_v13 = vld [vmem:[%s1309_s3 + $0x8] sm:$0xff]  ;;  %v420_v14 = vld [vmem:[%s1309_s3 + $0x10] sm:$0xff]  ;;  %v921_v18 = vpack.c.bf16 %v313_v11, %v312_v10 }
  0x2e   : > { %s723_s21 = sshll.u32 %s1323_s20, 3  ;;  %912 = vmatpush3.bf16.msra.mxu0 %v909_v3  ;;  %v421_v15 = vld [vmem:[%s1309_s3 + $0x18] sm:$0xff]  ;;  %v941_v16 = vpack.c.bf16 %v419_v13, %v418_v12  ;;  %v422_v19 = vld [vmem:[%s1309_s3 + $0x20] sm:$0xff]  ;;  %v423_v20 = vld [vmem:[%s1309_s3 + $0x28] sm:$0xff] }
  0x2f   : > { %s1201_s14 = scalar_lea.vmem %s1306_s0, %s723_s21  ;;  %914 = vmatprep.subr.bf16.mxu0 %v913_v5  ;;  %v945_v17 = vpack.c.bf16 %v421_v15, %v420_v14  ;;  %v314_v21 = vld [vmem:[%s1307_s1 + $0x40] sm:$0xff]  ;;  %v315_v22 = vld [vmem:[%s1307_s1 + $0x48] sm:$0xff]  ;;  %v949_v23 = vpack.c.bf16 %v423_v20, %v422_v19  ;;  %v424_v25 = vld [vmem:[%s1309_s3 + $0x30] sm:$0xff]  ;;  %s295_s17 = scalar_lea.vmem %s1313_s7, %s723_s21 }
  0x30   : > { %v297_v9 = vld [vmem:[%s1201_s14] sm:$0xff]  ;;  %942 = vmatprep.subr.bf16.mxu1 %v941_v16  ;;  %v925_v24 = vpack.c.bf16 %v315_v22, %v314_v21  ;;  %v425_v26 = vld [vmem:[%s1309_s3 + $0x38] sm:$0xff]  ;;  %v316_v27 = vld [vmem:[%s1307_s1 + $0x50] sm:$0xff] }
  0x31   : > { %827 = vmatprep.mubr.msk.f32.mxu0 %vm301_vm0, %v297_v9  ;;  %944 = vmatpush3.bf16.msra.mxu1 %v941_v16  ;;  %v317_v28 = vld [vmem:[%s1307_s1 + $0x58] sm:$0xff]  ;;  %v953_v29 = vpack.c.bf16 %v425_v26, %v424_v25  ;;  %v426_v31 = vld [vmem:[%s1309_s3 + $0x40] sm:$0xff]  ;;  %v427_v32 = vld [vmem:[%s1309_s3 + $0x48] sm:$0xff] }
  0x32   : > { %916 = vmatpush3.bf16.msra.mxu0 %v913_v5  ;;  %946 = vmatprep.subr.bf16.mxu1 %v945_v17  ;;  %v929_v30 = vpack.c.bf16 %v317_v28, %v316_v27  ;;  %v318_v33 = vld [vmem:[%s1307_s1 + $0x60] sm:$0xff]  ;;  %v319_v34 = vld [vmem:[%s1307_s1 + $0x68] sm:$0xff]  ;;  %v957_v35 = vpack.c.bf16 %v427_v32, %v426_v31  ;;  %v428_v37 = vld [vmem:[%s1309_s3 + $0x50] sm:$0xff] }
  0x33   : > { %918 = vmatprep.subr.bf16.mxu0 %v917_v8  ;;  %v933_v36 = vpack.c.bf16 %v319_v34, %v318_v33  ;;  %v429_v38 = vld [vmem:[%s1309_s3 + $0x58] sm:$0xff]  ;;  %v320_v39 = vld [vmem:[%s1307_s1 + $0x70] sm:$0xff]  ;;  %v430_v43 = vld [vmem:[%s1309_s3 + $0x60] sm:$0xff] }
  0x34   : > { %v321_v40 = vld [vmem:[%s1307_s1 + $0x78] sm:$0xff]  ;;  %v961_v41 = vpack.c.bf16 %v429_v38, %v428_v37  ;;  %v431_v44 = vld [vmem:[%s1309_s3 + $0x68] sm:$0xff]  ;;  %v299_v47 = vld [vmem:[%s1201_s14 + $0x10] sm:$0xff] }
  0x35   : > { %948 = vmatpush3.bf16.msra.mxu1 %v945_v17  ;;  %v937_v42 = vpack.c.bf16 %v321_v40, %v320_v39  ;;  %v965_v45 = vpack.c.bf16 %v431_v44, %v430_v43  ;;  %v298_v46 = vld [vmem:[%s1201_s14 + $0x8] sm:$0xff]  ;;  %v300_v48 = vld [vmem:[%s1201_s14 + $0x18] sm:$0xff]  ;;  %v432_v49 = vld [vmem:[%s1309_s3 + $0x70] sm:$0xff] }
  0x36   : > { %920 = vmatpush3.bf16.msra.mxu0 %v917_v8  ;;  %950 = vmatprep.subr.bf16.mxu1 %v949_v23  ;;  %v433_v50 = vld [vmem:[%s1309_s3 + $0x78] sm:$0xff]  ;;  %v530_v52 = vld [vmem:[#allocation2] sm:$0xff]  ;;  %v531_v53 = vld [vmem:[#allocation2 + $0x8] sm:$0xff] }
  0x37   : > { %922 = vmatprep.subr.bf16.mxu0 %v921_v18  ;;  %v969_v51 = vpack.c.bf16 %v433_v50, %v432_v49  ;;  %v532_v54 = vld [vmem:[#allocation2 + $0x10] sm:$0xff]  ;;  %v973_v55 = vpack.c.bf16 %v531_v53, %v530_v52  ;;  %v533_v56 = vld [vmem:[#allocation2 + $0x18] sm:$0xff]  ;;  %v534_v58 = vld [vmem:[#allocation2 + $0x20] sm:$0xff] }
  0x38   : > { %v977_v57 = vpack.c.bf16 %v533_v56, %v532_v54  ;;  %v535_v59 = vld [vmem:[#allocation2 + $0x28] sm:$0xff]  ;;  %v536_v61 = vld [vmem:[#allocation2 + $0x30] sm:$0xff]  ;;  %v537_v62 = vld [vmem:[#allocation2 + $0x38] sm:$0xff] }
  0x39   : > { %952 = vmatpush3.bf16.msra.mxu1 %v949_v23  ;;  %v981_v60 = vpack.c.bf16 %v535_v59, %v534_v58  ;;  %v985_v63 = vpack.c.bf16 %v537_v62, %v536_v61  ;;  %v538_v0 = vld [vmem:[#allocation2 + $0x40] sm:$0xff]  ;;  %v539_v1 = vld [vmem:[#allocation2 + $0x48] sm:$0xff]  ;;  %v540_v3 = vld [vmem:[#allocation2 + $0x50] sm:$0xff] }
  0x3a   : > { %924 = vmatpush3.bf16.msra.mxu0 %v921_v18  ;;  %954 = vmatprep.subr.bf16.mxu1 %v953_v29  ;;  %v989_v2 = vpack.c.bf16 %v539_v1, %v538_v0  ;;  %v541_v4 = vld [vmem:[#allocation2 + $0x58] sm:$0xff]  ;;  %v542_v6 = vld [vmem:[#allocation2 + $0x60] sm:$0xff]  ;;  %v543_v7 = vld [vmem:[#allocation2 + $0x68] sm:$0xff] }
  0x3b   : > { %926 = vmatprep.subr.bf16.mxu0 %v925_v24  ;;  %v993_v5 = vpack.c.bf16 %v541_v4, %v540_v3  ;;  %v997_v8 = vpack.c.bf16 %v543_v7, %v542_v6  ;;  %v726_v9 = vld [vmem:[%s1308_s2] ss:$0 sm:$0xff]  ;;  %v544_v22 = vld [vmem:[#allocation2 + $0x70] sm:$0xff]  ;;  %v545_v23 = vld [vmem:[#allocation2 + $0x78] sm:$0xff] }
  0x3c   : > { %v731_v25 = vld [vmem:[%s1310_s4] ss:$0 sm:$0xff] }
  0x3d   : > { %956 = vmatpush3.bf16.msra.mxu1 %v953_v29  ;;  %v732_v38 = vld [vmem:[%s1312_s6] ss:$0 sm:$0xff] }
  0x3e   : > { %928 = vmatpush3.bf16.msra.mxu0 %v925_v24  ;;  %958 = vmatprep.subr.bf16.mxu1 %v957_v35  ;;  %v1001_v24 = vpack.c.bf16 %v545_v23, %v544_v22 }
  0x3f   : > { %930 = vmatprep.subr.bf16.mxu0 %v929_v30 }
  0x41   : > { %960 = vmatpush3.bf16.msra.mxu1 %v957_v35 }
  0x42   : > { %932 = vmatpush3.bf16.msra.mxu0 %v929_v30  ;;  %962 = vmatprep.subr.bf16.mxu1 %v961_v41 }
  0x43   : > { %934 = vmatprep.subr.bf16.mxu0 %v933_v36 }
  0x45   : > { %964 = vmatpush3.bf16.msra.mxu1 %v961_v41 }
  0x46   : > { %936 = vmatpush3.bf16.msra.mxu0 %v933_v36  ;;  %966 = vmatprep.subr.bf16.mxu1 %v965_v45 }
  0x47   : > { %938 = vmatprep.subr.bf16.mxu0 %v937_v42 }
  0x49   : > { %968 = vmatpush3.bf16.msra.mxu1 %v965_v45 }
  0x4a   : > { %940 = vmatpush3.bf16.msra.mxu0 %v937_v42  ;;  %970 = vmatprep.subr.bf16.mxu1 %v969_v51 }
  0x4b   : > { %974 = vmatprep.subr.bf16.mxu0 %v973_v55 }
  0x4d   : > { %828 = vmatmul.mubr.msk.f32.vlgmr.msra.gmra.mrb[0].mxu0 %vm301_vm0, %v298_v46  ;;  %972 = vmatpush3.bf16.msra.mxu1 %v969_v51 }
  0x4e   : > { %830 = vmatprep.mubr.msk.f32.mxu0 %vm301_vm0, %v299_v47  ;;  %1005 = vmatprep.subr.bf16.mxu1 %v973_v55 }
  0x4f   : > { %976 = vmatpush3.bf16.msra.mxu0 %v973_v55 }
  0x50   : > { %978 = vmatprep.subr.bf16.mxu0 %v977_v57 }
  0x51   : > { %831 = vmatmul.mubr.msk.f32.gmra.mrb[2].mxu0 %vm301_vm0, %v300_v48 }
  0x53   : > { %980 = vmatpush3.bf16.msra.mxu0 %v977_v57 }
  0x54   : > { %982 = vmatprep.subr.bf16.mxu0 %v981_v60 }
  0x57   : > { %984 = vmatpush3.bf16.msra.mxu0 %v981_v60 }
  0x58   : > { %986 = vmatprep.subr.bf16.mxu0 %v985_v63 }
  0x5b   : > { %988 = vmatpush3.bf16.msra.mxu0 %v985_v63 }
  0x5c   : > { %990 = vmatprep.subr.bf16.mxu0 %v989_v2 }
  0x5f   : > { %992 = vmatpush3.bf16.msra.mxu0 %v989_v2 }
  0x60   : > { %994 = vmatprep.subr.bf16.mxu0 %v993_v5 }
  0x63   : > { %996 = vmatpush3.bf16.msra.mxu0 %v993_v5 }
  0x64   : > { %998 = vmatprep.subr.bf16.mxu0 %v997_v8 }
  0x67   : > { %1000 = vmatpush3.bf16.msra.mxu0 %v997_v8 }
  0x68   : > { %1002 = vmatprep.subr.bf16.mxu0 %v1001_v24 }
  0x6b   : > { %1004 = vmatpush3.bf16.msra.mxu0 %v1001_v24 }
 0x120   : > { %v829_v10 = vpop.f32.mrb[0].mxu0 }
 0x121   : > { %v401_v11 = vadd.f32 %v829_v10, %v726_v9  ;;  %v395_v12 = vpop.f32.mrb[1].mxu0 }
 0x122   : > { %v396_v13 = vadd.f32 %v726_v9, %v395_v12 }
 0x123   : > { %v415_v16 = vmax.f32 %v401_v11, 0.0 }
 0x124   : > { %v832_v14 = vpop.f32.mrb[2].mxu0  ;;  %v414_v15 = vmax.f32 %v396_v13, 0.0 }
 0x125   : > { %v411_v17 = vadd.f32 %v832_v14, %v726_v9  ;;  %v405_v18 = vpop.f32.mrb[3].mxu0 }
 0x126   : > { %v406_v19 = vadd.f32 %v726_v9, %v405_v18  ;;  %865 = vmatprep.mubr.f32.mxu1 %v414_v15 }
 0x127   : > { %866 = vmatmul.mubr.f32.vlgmr.msra.gmra.mrb[0].mxu1 %v415_v16  ;;  %v417_v21 = vmax.f32 %v411_v17, 0.0 }
 0x128   : > { %v416_v20 = vmax.f32 %v406_v19, 0.0  ;;  %1013 = vmatpush3.bf16.msra.mxu1 %v973_v55 }
 0x129   : > { %1006 = vmatprep.subr.bf16.mxu1 %v977_v57 }
 0x12a   : > { %868 = vmatprep.mubr.f32.mxu1 %v416_v20 }
 0x12b   : > { %869 = vmatmul.mubr.f32.gmra.mrb[2].mxu1 %v417_v21 }
 0x12c   : > { %1014 = vmatpush3.bf16.msra.mxu1 %v977_v57 }
 0x12d   : > { %1007 = vmatprep.subr.bf16.mxu1 %v981_v60 }
 0x130   : > { %1015 = vmatpush3.bf16.msra.mxu1 %v981_v60 }
 0x131   : > { %1008 = vmatprep.subr.bf16.mxu1 %v985_v63 }
 0x134   : > { %1016 = vmatpush3.bf16.msra.mxu1 %v985_v63 }
 0x135   : > { %1009 = vmatprep.subr.bf16.mxu1 %v989_v2 }
 0x138   : > { %1017 = vmatpush3.bf16.msra.mxu1 %v989_v2 }
 0x139   : > { %1010 = vmatprep.subr.bf16.mxu1 %v993_v5 }
 0x13c   : > { %1018 = vmatpush3.bf16.msra.mxu1 %v993_v5 }
 0x13d   : > { %1011 = vmatprep.subr.bf16.mxu1 %v997_v8 }
 0x140   : > { %1019 = vmatpush3.bf16.msra.mxu1 %v997_v8 }
 0x141   : > { %1012 = vmatprep.subr.bf16.mxu1 %v1001_v24 }
 0x144   : > { %1020 = vmatpush3.bf16.msra.mxu1 %v1001_v24 }
 0x1fa   : > { %v867_v26 = vpop.f32.mrb[0].mxu1 }
 0x1fb   : > { %v513_v27 = vadd.f32 %v867_v26, %v731_v25  ;;  %v507_v28 = vpop.f32.mrb[1].mxu1 }
 0x1fc   : > { %v508_v29 = vadd.f32 %v731_v25, %v507_v28 }
 0x1fd   : > { %v527_v32 = vmax.f32 %v513_v27, 0.0 }
 0x1fe   : > { %v526_v30 = vmax.f32 %v508_v29, 0.0  ;;  %v870_v31 = vpop.f32.mrb[2].mxu1 }
 0x1ff   : > { %v523_v33 = vadd.f32 %v870_v31, %v731_v25  ;;  %v517_v34 = vpop.f32.mrb[3].mxu1 }
 0x200   : > { %v518_v35 = vadd.f32 %v731_v25, %v517_v34  ;;  %903 = vmatprep.mubr.f32.mxu0 %v526_v30 }
 0x201   : > { %904 = vmatmul.mubr.f32.vlgmr.msra.gmra.mrb[4].mxu0 %v527_v32  ;;  %v529_v37 = vmax.f32 %v523_v33, 0.0 }
 0x202   : > { %v528_v36 = vmax.f32 %v518_v35, 0.0 }
 0x204   : > { %906 = vmatprep.mubr.f32.mxu1 %v528_v36 }
 0x205   : > { %907 = vmatmul.mubr.f32.vlgmr.msra.gmra.mrb[4].mxu1 %v529_v37 }
 0x2d4   : > { %v905_v39 = vpop.f32.mrb[4].mxu0 }
 0x2d5   : > { %v639_v40 = vadd.f32 %v905_v39, %v732_v38  ;;  %v613_v41 = vpop.f32.mrb[5].mxu0 }
 0x2d6   : > { %v638_v42 = vadd.f32 %v732_v38, %v613_v41 }
 0x2d7   : > { %644 = vst.msk [vmem:[%s295_s17 + $0x8] sm:$0xff] %vm642_vm1, %v639_v40 }
 0x2d8   : > { %643 = vst.msk [vmem:[%s295_s17] sm:$0xff] %vm642_vm1, %v638_v42  ;;  %v908_v43 = vpop.f32.mrb[4].mxu1 }
 0x2d9   : > { %v641_v44 = vadd.f32 %v908_v43, %v732_v38  ;;  %v623_v45 = vpop.f32.mrb[5].mxu1 }
 0x2da   : > { %v640_v46 = vadd.f32 %v732_v38, %v623_v45 }
 0x2db   : > { %646 = vst.msk [vmem:[%s295_s17 + $0x18] sm:$0xff] %vm642_vm1, %v641_v44 }
 0x2dc   : > { %645 = vst.msk [vmem:[%s295_s17 + $0x10] sm:$0xff] %vm642_vm1, %v640_v46 }
 0x2dd PF: > { %s18_s24 = sadd.s32 1, %s1080_s24  }
 0x2de   : > { %p15_p3 = scmp.ge.s32.totalorder %s18_s24, 10  }
 0x2e0   :  { %17 = sbr.rel (!%p15_p3) target bundleno = 1 (0x1), region = 83 }
 0x2e7   :  { %669 = vsyncpa [#allocation3], 1 }
 0x2e8   :  { %671 = vsyncpa [#allocation3 + $0x1], 1 }

// kernel: mlp_pallas.1
= control target key start
LH: loop header
LB: loop body
LE: loop exit
PB: predicated region body
PF: predicated region fallthrough
CT: control target
= control target key end

     0   :  { %12 = vsyncpa [#allocation3], 0  ;;  %s1125_s24 = smov 0   ;;  %s1306_s0 = inlined_call_operand.vmem [shape: f32[256,4], index: 0, kind: input, shape index: {}]   ;;  %s1307_s1 = inlined_call_operand.vmem [shape: f32[128,128], index: 1, kind: input, shape index: {}]   ;;  %s1308_s2 = inlined_call_operand.vmem [shape: f32[1,128], index: 2, kind: input, shape index: {}]   ;;  %s1309_s3 = inlined_call_operand.vmem [shape: f32[128,128], index: 3, kind: input, shape index: {}]   ;;  %s1310_s4 = inlined_call_operand.vmem [shape: f32[1,128], index: 4, kind: input, shape index: {}]   ;;  %s1311_s5 = inlined_call_operand.hbm [shape: f32[128,128], index: 5, kind: input, shape index: {}]   ;;  %s1312_s6 = inlined_call_operand.vmem [shape: f32[1,3], index: 6, kind: input, shape index: {}]   ;;  %s1313_s7 = inlined_call_operand.vmem [shape: f32[256,3], index: 7, kind: output, shape index: {}]  }
   0x1 LB: > { %s715_s25 = sadd.s32 4294967295, %s1080_s24   ;;  %p717_p0 = scmp.ge.s32.totalorder %s1080_s24, 1  ;;  %s1080_s24 = sphi %s1125_s24, %s18_s24  }
   0x2   : > { %p201_p1 = scmp.lt.s32.totalorder %s1080_s24, 9  ;;  %s1082_s26 = smov [#allocation2]  }
   0x3   : > { %s225_s27 = sshll.u32 %s1082_s26, 4  ;;  %p1139_p3 = scmp.eq.s32.totalorder %s715_s25, 0  ;;  %s226_s27 = int_to_ptr.vmem [resolvable:$true] %s225_s27 }
   0x4   : > { %p1133_p2 = pnand %p717_p0, %p201_p1  ;;  %s1042_s10 = scalar_lea.hbm %s1311_s5, 2048 }
   0x5   : > { %s1318_s29 = scalar_select %p1139_p3, 1, 0 }
   0x6   : > { %s1317_s28 = scalar_select %p1133_p2, 1, 0 }
   0x7   : > { %p1025_p4 = pneg %p1133_p2  ;;  %p1043_p6 = scmp.ne.s32.totalorder %s1311_s5, %s1042_s10 }
   0x8   : > { %p1049_p10 = scmp.lt.u32.totalorder %s1042_s10, %s1311_s5 }
   0x9   : > { %p1147_p5 = pnand %p1139_p3, %p1025_p4 }
   0xb   : > { %p1044_p7 = pneg %p1147_p5 }
   0xd   : > { %p1045_p8 = pnand %p1044_p7, %p1043_p6 }
   0xf   : > { %p1046_p9 = pneg %p1045_p8 }
  0x11   : > { %p1051_p11 = pnand %p1049_p10, %p1046_p9 }
  0x13   : > { %1054 = shalt.err (!%p1051_p11)
}
  0x14   : > { %s1055_s15 = scalar_lea.vmem %s226_s27, 2048  ;;  %p1063_p1 = scmp.lt.s32.totalorder %s226_s27, %s226_s27 }
  0x15   : > { %p1056_p12 = scmp.ne.s32.totalorder %s226_s27, %s1055_s15  ;;  %p1064_p4 = scmp.lt.s32.totalorder %s1055_s15, %s1055_s15 }
  0x17   : > { %p1058_p13 = pnand %p1056_p12, %p1044_p7  ;;  %p1065_p3 = por %p1064_p4, %p1063_p1 }
  0x19   : > { %p1059_p0 = pneg %p1058_p13 }
  0x1b   : > { %p1066_p2 = pnand %p1065_p3, %p1059_p0 }
  0x1d   : > { %1069 = shalt.err (!%p1066_p2)
}
  0x1e   : > { %s1083_s16 = smov 128   ;;  %s1084_s17 = smov 8  }
  0x1f   : > { %1028 = dma.hbm_to_vmem [thread:$0]  (!%p1147_p5), %s1311_s5, 2048, %s226_s27, [#allocation3], %s1083_s16, %s1083_s16, %s1084_s17  }
  0x20   : > { %p1320_p6 = scmp.ne.s32.totalorder %s1317_s28, 0 }
  0x21   : > { %p1321_p8 = scmp.ne.s32.totalorder (!%p1320_p6), %s1318_s29, 0 }
  0x22   : > { %253 = sbr.rel (%p1320_p6) target bundleno = 733 (0x2dd), region = 48 }
  0x29   : > { %1075 = dma.done.wait (%p1321_p8), [#allocation3], 2048  }
  0x2a   : > { %1077 = vsyncadd (%p1321_p8), [#allocation3], 4294965248  ;;  %s722_s20 = sshll.u32 %s715_s25, 2  ;;  %v306_v0 = vld [vmem:[%s1307_s1] sm:$0xff]  ;;  %v307_v1 = vld [vmem:[%s1307_s1 + $0x8] sm:$0xff]  ;;  %vm301_vm0 = vcmask 31744  }
  0x2b   : > { %p286_p2 = scmp.lt.s32.totalorder %s722_s20, 31  ;;  %v308_v2 = vld [vmem:[%s1307_s1 + $0x10] sm:$0xff]  ;;  %v909_v3 = vpack.c.bf16 %v307_v1, %v306_v0  ;;  %v309_v4 = vld [vmem:[%s1307_s1 + $0x18] sm:$0xff]  ;;  %v310_v6 = vld [vmem:[%s1307_s1 + $0x20] sm:$0xff]  ;;  %vm642_vm1 = vcmask 23552  }
  0x2c   : > { %v913_v5 = vpack.c.bf16 %v309_v4, %v308_v2  ;;  %v311_v7 = vld [vmem:[%s1307_s1 + $0x28] sm:$0xff]  ;;  %v312_v10 = vld [vmem:[%s1307_s1 + $0x30] sm:$0xff]  ;;  %v313_v11 = vld [vmem:[%s1307_s1 + $0x38] sm:$0xff] }
  0x2d   : > { %s1323_s20 = smov (!%p286_p2, %s722_s20), 31  ;;  %910 = vmatprep.subr.bf16.mxu0 %v909_v3  ;;  %v917_v8 = vpack.c.bf16 %v311_v7, %v310_v6  ;;  %v418_v12 = vld [vmem:[%s1309_s3] sm:$0xff]  ;;  %v419_v13 = vld [vmem:[%s1309_s3 + $0x8] sm:$0xff]  ;;  %v420_v14 = vld [vmem:[%s1309_s3 + $0x10] sm:$0xff]  ;;  %v921_v18 = vpack.c.bf16 %v313_v11, %v312_v10 }
  0x2e   : > { %s723_s21 = sshll.u32 %s1323_s20, 3  ;;  %912 = vmatpush3.bf16.msra.mxu0 %v909_v3  ;;  %v421_v15 = vld [vmem:[%s1309_s3 + $0x18] sm:$0xff]  ;;  %v941_v16 = vpack.c.bf16 %v419_v13, %v418_v12  ;;  %v422_v19 = vld [vmem:[%s1309_s3 + $0x20] sm:$0xff]  ;;  %v423_v20 = vld [vmem:[%s1309_s3 + $0x28] sm:$0xff] }
  0x2f   : > { %s1201_s14 = scalar_lea.vmem %s1306_s0, %s723_s21  ;;  %914 = vmatprep.subr.bf16.mxu0 %v913_v5  ;;  %v945_v17 = vpack.c.bf16 %v421_v15, %v420_v14  ;;  %v314_v21 = vld [vmem:[%s1307_s1 + $0x40] sm:$0xff]  ;;  %v315_v22 = vld [vmem:[%s1307_s1 + $0x48] sm:$0xff]  ;;  %v949_v23 = vpack.c.bf16 %v423_v20, %v422_v19  ;;  %v424_v25 = vld [vmem:[%s1309_s3 + $0x30] sm:$0xff]  ;;  %s295_s17 = scalar_lea.vmem %s1313_s7, %s723_s21 }
  0x30   : > { %v297_v9 = vld [vmem:[%s1201_s14] sm:$0xff]  ;;  %942 = vmatprep.subr.bf16.mxu1 %v941_v16  ;;  %v925_v24 = vpack.c.bf16 %v315_v22, %v314_v21  ;;  %v425_v26 = vld [vmem:[%s1309_s3 + $0x38] sm:$0xff]  ;;  %v316_v27 = vld [vmem:[%s1307_s1 + $0x50] sm:$0xff] }
  0x31   : > { %827 = vmatprep.mubr.msk.f32.mxu0 %vm301_vm0, %v297_v9  ;;  %944 = vmatpush3.bf16.msra.mxu1 %v941_v16  ;;  %v317_v28 = vld [vmem:[%s1307_s1 + $0x58] sm:$0xff]  ;;  %v953_v29 = vpack.c.bf16 %v425_v26, %v424_v25  ;;  %v426_v31 = vld [vmem:[%s1309_s3 + $0x40] sm:$0xff]  ;;  %v427_v32 = vld [vmem:[%s1309_s3 + $0x48] sm:$0xff] }
  0x32   : > { %916 = vmatpush3.bf16.msra.mxu0 %v913_v5  ;;  %946 = vmatprep.subr.bf16.mxu1 %v945_v17  ;;  %v929_v30 = vpack.c.bf16 %v317_v28, %v316_v27  ;;  %v318_v33 = vld [vmem:[%s1307_s1 + $0x60] sm:$0xff]  ;;  %v319_v34 = vld [vmem:[%s1307_s1 + $0x68] sm:$0xff]  ;;  %v957_v35 = vpack.c.bf16 %v427_v32, %v426_v31  ;;  %v428_v37 = vld [vmem:[%s1309_s3 + $0x50] sm:$0xff] }
  0x33   : > { %918 = vmatprep.subr.bf16.mxu0 %v917_v8  ;;  %v933_v36 = vpack.c.bf16 %v319_v34, %v318_v33  ;;  %v429_v38 = vld [vmem:[%s1309_s3 + $0x58] sm:$0xff]  ;;  %v320_v39 = vld [vmem:[%s1307_s1 + $0x70] sm:$0xff]  ;;  %v430_v43 = vld [vmem:[%s1309_s3 + $0x60] sm:$0xff] }
  0x34   : > { %v321_v40 = vld [vmem:[%s1307_s1 + $0x78] sm:$0xff]  ;;  %v961_v41 = vpack.c.bf16 %v429_v38, %v428_v37  ;;  %v431_v44 = vld [vmem:[%s1309_s3 + $0x68] sm:$0xff]  ;;  %v299_v47 = vld [vmem:[%s1201_s14 + $0x10] sm:$0xff] }
  0x35   : > { %948 = vmatpush3.bf16.msra.mxu1 %v945_v17  ;;  %v937_v42 = vpack.c.bf16 %v321_v40, %v320_v39  ;;  %v965_v45 = vpack.c.bf16 %v431_v44, %v430_v43  ;;  %v298_v46 = vld [vmem:[%s1201_s14 + $0x8] sm:$0xff]  ;;  %v300_v48 = vld [vmem:[%s1201_s14 + $0x18] sm:$0xff]  ;;  %v432_v49 = vld [vmem:[%s1309_s3 + $0x70] sm:$0xff] }
  0x36   : > { %920 = vmatpush3.bf16.msra.mxu0 %v917_v8  ;;  %950 = vmatprep.subr.bf16.mxu1 %v949_v23  ;;  %v433_v50 = vld [vmem:[%s1309_s3 + $0x78] sm:$0xff]  ;;  %v530_v52 = vld [vmem:[#allocation2] sm:$0xff]  ;;  %v531_v53 = vld [vmem:[#allocation2 + $0x8] sm:$0xff] }
  0x37   : > { %922 = vmatprep.subr.bf16.mxu0 %v921_v18  ;;  %v969_v51 = vpack.c.bf16 %v433_v50, %v432_v49  ;;  %v532_v54 = vld [vmem:[#allocation2 + $0x10] sm:$0xff]  ;;  %v973_v55 = vpack.c.bf16 %v531_v53, %v530_v52  ;;  %v533_v56 = vld [vmem:[#allocation2 + $0x18] sm:$0xff]  ;;  %v534_v58 = vld [vmem:[#allocation2 + $0x20] sm:$0xff] }
  0x38   : > { %v977_v57 = vpack.c.bf16 %v533_v56, %v532_v54  ;;  %v535_v59 = vld [vmem:[#allocation2 + $0x28] sm:$0xff]  ;;  %v536_v61 = vld [vmem:[#allocation2 + $0x30] sm:$0xff]  ;;  %v537_v62 = vld [vmem:[#allocation2 + $0x38] sm:$0xff] }
  0x39   : > { %952 = vmatpush3.bf16.msra.mxu1 %v949_v23  ;;  %v981_v60 = vpack.c.bf16 %v535_v59, %v534_v58  ;;  %v985_v63 = vpack.c.bf16 %v537_v62, %v536_v61  ;;  %v538_v0 = vld [vmem:[#allocation2 + $0x40] sm:$0xff]  ;;  %v539_v1 = vld [vmem:[#allocation2 + $0x48] sm:$0xff]  ;;  %v540_v3 = vld [vmem:[#allocation2 + $0x50] sm:$0xff] }
  0x3a   : > { %924 = vmatpush3.bf16.msra.mxu0 %v921_v18  ;;  %954 = vmatprep.subr.bf16.mxu1 %v953_v29  ;;  %v989_v2 = vpack.c.bf16 %v539_v1, %v538_v0  ;;  %v541_v4 = vld [vmem:[#allocation2 + $0x58] sm:$0xff]  ;;  %v542_v6 = vld [vmem:[#allocation2 + $0x60] sm:$0xff]  ;;  %v543_v7 = vld [vmem:[#allocation2 + $0x68] sm:$0xff] }
  0x3b   : > { %926 = vmatprep.subr.bf16.mxu0 %v925_v24  ;;  %v993_v5 = vpack.c.bf16 %v541_v4, %v540_v3  ;;  %v997_v8 = vpack.c.bf16 %v543_v7, %v542_v6  ;;  %v726_v9 = vld [vmem:[%s1308_s2] ss:$0 sm:$0xff]  ;;  %v544_v22 = vld [vmem:[#allocation2 + $0x70] sm:$0xff]  ;;  %v545_v23 = vld [vmem:[#allocation2 + $0x78] sm:$0xff] }
  0x3c   : > { %v731_v25 = vld [vmem:[%s1310_s4] ss:$0 sm:$0xff] }
  0x3d   : > { %956 = vmatpush3.bf16.msra.mxu1 %v953_v29  ;;  %v732_v38 = vld [vmem:[%s1312_s6] ss:$0 sm:$0xff] }
  0x3e   : > { %928 = vmatpush3.bf16.msra.mxu0 %v925_v24  ;;  %958 = vmatprep.subr.bf16.mxu1 %v957_v35  ;;  %v1001_v24 = vpack.c.bf16 %v545_v23, %v544_v22 }
  0x3f   : > { %930 = vmatprep.subr.bf16.mxu0 %v929_v30 }
  0x41   : > { %960 = vmatpush3.bf16.msra.mxu1 %v957_v35 }
  0x42   : > { %932 = vmatpush3.bf16.msra.mxu0 %v929_v30  ;;  %962 = vmatprep.subr.bf16.mxu1 %v961_v41 }
  0x43   : > { %934 = vmatprep.subr.bf16.mxu0 %v933_v36 }
  0x45   : > { %964 = vmatpush3.bf16.msra.mxu1 %v961_v41 }
  0x46   : > { %936 = vmatpush3.bf16.msra.mxu0 %v933_v36  ;;  %966 = vmatprep.subr.bf16.mxu1 %v965_v45 }
  0x47   : > { %938 = vmatprep.subr.bf16.mxu0 %v937_v42 }
  0x49   : > { %968 = vmatpush3.bf16.msra.mxu1 %v965_v45 }
  0x4a   : > { %940 = vmatpush3.bf16.msra.mxu0 %v937_v42  ;;  %970 = vmatprep.subr.bf16.mxu1 %v969_v51 }
  0x4b   : > { %974 = vmatprep.subr.bf16.mxu0 %v973_v55 }
  0x4d   : > { %828 = vmatmul.mubr.msk.f32.vlgmr.msra.gmra.mrb[0].mxu0 %vm301_vm0, %v298_v46  ;;  %972 = vmatpush3.bf16.msra.mxu1 %v969_v51 }
  0x4e   : > { %830 = vmatprep.mubr.msk.f32.mxu0 %vm301_vm0, %v299_v47  ;;  %1005 = vmatprep.subr.bf16.mxu1 %v973_v55 }
  0x4f   : > { %976 = vmatpush3.bf16.msra.mxu0 %v973_v55 }
  0x50   : > { %978 = vmatprep.subr.bf16.mxu0 %v977_v57 }
  0x51   : > { %831 = vmatmul.mubr.msk.f32.gmra.mrb[2].mxu0 %vm301_vm0, %v300_v48 }
  0x53   : > { %980 = vmatpush3.bf16.msra.mxu0 %v977_v57 }
  0x54   : > { %982 = vmatprep.subr.bf16.mxu0 %v981_v60 }
  0x57   : > { %984 = vmatpush3.bf16.msra.mxu0 %v981_v60 }
  0x58   : > { %986 = vmatprep.subr.bf16.mxu0 %v985_v63 }
  0x5b   : > { %988 = vmatpush3.bf16.msra.mxu0 %v985_v63 }
  0x5c   : > { %990 = vmatprep.subr.bf16.mxu0 %v989_v2 }
  0x5f   : > { %992 = vmatpush3.bf16.msra.mxu0 %v989_v2 }
  0x60   : > { %994 = vmatprep.subr.bf16.mxu0 %v993_v5 }
  0x63   : > { %996 = vmatpush3.bf16.msra.mxu0 %v993_v5 }
  0x64   : > { %998 = vmatprep.subr.bf16.mxu0 %v997_v8 }
  0x67   : > { %1000 = vmatpush3.bf16.msra.mxu0 %v997_v8 }
  0x68   : > { %1002 = vmatprep.subr.bf16.mxu0 %v1001_v24 }
  0x6b   : > { %1004 = vmatpush3.bf16.msra.mxu0 %v1001_v24 }
 0x120   : > { %v829_v10 = vpop.f32.mrb[0].mxu0 }
 0x121   : > { %v401_v11 = vadd.f32 %v829_v10, %v726_v9  ;;  %v395_v12 = vpop.f32.mrb[1].mxu0 }
 0x122   : > { %v396_v13 = vadd.f32 %v726_v9, %v395_v12 }
 0x123   : > { %v415_v16 = vmax.f32 %v401_v11, 0.0 }
 0x124   : > { %v832_v14 = vpop.f32.mrb[2].mxu0  ;;  %v414_v15 = vmax.f32 %v396_v13, 0.0 }
 0x125   : > { %v411_v17 = vadd.f32 %v832_v14, %v726_v9  ;;  %v405_v18 = vpop.f32.mrb[3].mxu0 }
 0x126   : > { %v406_v19 = vadd.f32 %v726_v9, %v405_v18  ;;  %865 = vmatprep.mubr.f32.mxu1 %v414_v15 }
 0x127   : > { %866 = vmatmul.mubr.f32.vlgmr.msra.gmra.mrb[0].mxu1 %v415_v16  ;;  %v417_v21 = vmax.f32 %v411_v17, 0.0 }
 0x128   : > { %v416_v20 = vmax.f32 %v406_v19, 0.0  ;;  %1013 = vmatpush3.bf16.msra.mxu1 %v973_v55 }
 0x129   : > { %1006 = vmatprep.subr.bf16.mxu1 %v977_v57 }
 0x12a   : > { %868 = vmatprep.mubr.f32.mxu1 %v416_v20 }
 0x12b   : > { %869 = vmatmul.mubr.f32.gmra.mrb[2].mxu1 %v417_v21 }
 0x12c   : > { %1014 = vmatpush3.bf16.msra.mxu1 %v977_v57 }
 0x12d   : > { %1007 = vmatprep.subr.bf16.mxu1 %v981_v60 }
 0x130   : > { %1015 = vmatpush3.bf16.msra.mxu1 %v981_v60 }
 0x131   : > { %1008 = vmatprep.subr.bf16.mxu1 %v985_v63 }
 0x134   : > { %1016 = vmatpush3.bf16.msra.mxu1 %v985_v63 }
 0x135   : > { %1009 = vmatprep.subr.bf16.mxu1 %v989_v2 }
 0x138   : > { %1017 = vmatpush3.bf16.msra.mxu1 %v989_v2 }
 0x139   : > { %1010 = vmatprep.subr.bf16.mxu1 %v993_v5 }
 0x13c   : > { %1018 = vmatpush3.bf16.msra.mxu1 %v993_v5 }
 0x13d   : > { %1011 = vmatprep.subr.bf16.mxu1 %v997_v8 }
 0x140   : > { %1019 = vmatpush3.bf16.msra.mxu1 %v997_v8 }
 0x141   : > { %1012 = vmatprep.subr.bf16.mxu1 %v1001_v24 }
 0x144   : > { %1020 = vmatpush3.bf16.msra.mxu1 %v1001_v24 }
 0x1fa   : > { %v867_v26 = vpop.f32.mrb[0].mxu1 }
 0x1fb   : > { %v513_v27 = vadd.f32 %v867_v26, %v731_v25  ;;  %v507_v28 = vpop.f32.mrb[1].mxu1 }
 0x1fc   : > { %v508_v29 = vadd.f32 %v731_v25, %v507_v28 }
 0x1fd   : > { %v527_v32 = vmax.f32 %v513_v27, 0.0 }
 0x1fe   : > { %v526_v30 = vmax.f32 %v508_v29, 0.0  ;;  %v870_v31 = vpop.f32.mrb[2].mxu1 }
 0x1ff   : > { %v523_v33 = vadd.f32 %v870_v31, %v731_v25  ;;  %v517_v34 = vpop.f32.mrb[3].mxu1 }
 0x200   : > { %v518_v35 = vadd.f32 %v731_v25, %v517_v34  ;;  %903 = vmatprep.mubr.f32.mxu0 %v526_v30 }
 0x201   : > { %904 = vmatmul.mubr.f32.vlgmr.msra.gmra.mrb[4].mxu0 %v527_v32  ;;  %v529_v37 = vmax.f32 %v523_v33, 0.0 }
 0x202   : > { %v528_v36 = vmax.f32 %v518_v35, 0.0 }
 0x204   : > { %906 = vmatprep.mubr.f32.mxu1 %v528_v36 }
 0x205   : > { %907 = vmatmul.mubr.f32.vlgmr.msra.gmra.mrb[4].mxu1 %v529_v37 }
 0x2d4   : > { %v905_v39 = vpop.f32.mrb[4].mxu0 }
 0x2d5   : > { %v639_v40 = vadd.f32 %v905_v39, %v732_v38  ;;  %v613_v41 = vpop.f32.mrb[5].mxu0 }
 0x2d6   : > { %v638_v42 = vadd.f32 %v732_v38, %v613_v41 }
 0x2d7   : > { %644 = vst.msk [vmem:[%s295_s17 + $0x8] sm:$0xff] %vm642_vm1, %v639_v40 }
 0x2d8   : > { %643 = vst.msk [vmem:[%s295_s17] sm:$0xff] %vm642_vm1, %v638_v42  ;;  %v908_v43 = vpop.f32.mrb[4].mxu1 }
 0x2d9   : > { %v641_v44 = vadd.f32 %v908_v43, %v732_v38  ;;  %v623_v45 = vpop.f32.mrb[5].mxu1 }
 0x2da   : > { %v640_v46 = vadd.f32 %v732_v38, %v623_v45 }
 0x2db   : > { %646 = vst.msk [vmem:[%s295_s17 + $0x18] sm:$0xff] %vm642_vm1, %v641_v44 }
 0x2dc   : > { %645 = vst.msk [vmem:[%s295_s17 + $0x10] sm:$0xff] %vm642_vm1, %v640_v46 }
 0x2dd PF: > { %s18_s24 = sadd.s32 1, %s1080_s24  }
 0x2de   : > { %p15_p3 = scmp.ge.s32.totalorder %s18_s24, 10  }
 0x2e0   :  { %17 = sbr.rel (!%p15_p3) target bundleno = 1 (0x1), region = 83 }
 0x2e7   :  { %669 = vsyncpa [#allocation3], 1 }
 0x2e8   :  { %671 = vsyncpa [#allocation3 + $0x1], 1 }

// kernel: mlp_pallas.1
= control target key start
LH: loop header
LB: loop body
LE: loop exit
PB: predicated region body
PF: predicated region fallthrough
CT: control target
= control target key end

     0   :  { %s1039_s24 = smov 0   ;;  %s1222_s0 = inlined_call_operand.vmem [shape: f32[256,128], index: 0, kind: input, shape index: {}]   ;;  %s1223_s1 = inlined_call_operand.vmem [shape: f32[128,128], index: 1, kind: input, shape index: {}]   ;;  %s1224_s2 = inlined_call_operand.vmem [shape: f32[1,128], index: 2, kind: input, shape index: {}]   ;;  %s1225_s3 = inlined_call_operand.vmem [shape: f32[128,128], index: 3, kind: input, shape index: {}]   ;;  %s1226_s4 = inlined_call_operand.vmem [shape: f32[1,128], index: 4, kind: input, shape index: {}]   ;;  %s1227_s5 = inlined_call_operand.vmem [shape: f32[128,128], index: 5, kind: input, shape index: {}]   ;;  %s1228_s6 = inlined_call_operand.vmem [shape: f32[1,3], index: 6, kind: input, shape index: {}]   ;;  %s1229_s7 = inlined_call_operand.vmem [shape: f32[256,3], index: 7, kind: output, shape index: {}]  }
   0x1 LB: > { %s683_s25 = sadd.s32 4294967295, %s997_s24   ;;  %p687_p0 = scmp.ge.s32.totalorder %s997_s24, 1  ;;  %s997_s24 = sphi %s1039_s24, %s17_s24  }
   0x2   : > { %p238_p1 = scmp.lt.s32.totalorder %s997_s24, 9 }
   0x4   : > { %p239_p2 = pnand %p687_p0, %p238_p1 }
   0x5   : > { %v286_v0 = vld [vmem:[%s1223_s1] sm:$0xff] (!%p239_p2)  ;;  %v287_v1 = vld [vmem:[%s1223_s1 + $0x8] sm:$0xff] (!%p239_p2)  ;;  %v288_v2 = vld [vmem:[%s1223_s1 + $0x10] sm:$0xff] (!%p239_p2)  ;;  %s688_s9 = sshll.u32 (!%p239_p2), %s683_s25, 2  ;;  %vm622_vm0 = vcmask (!%p239_p2), 23552  }
   0x6   : > { %242 = sbr.rel (%p239_p2) target bundleno = 696 (0x2b8), region = 48  ;;  %v871_v3 = vpack.c.bf16 (!%p239_p2), %v287_v1, %v286_v0  ;;  %v289_v4 = vld [vmem:[%s1223_s1 + $0x18] sm:$0xff] (!%p239_p2)  ;;  %p271_p3 = scmp.lt.s32.totalorder (!%p239_p2), %s688_s9, 31  ;;  %v290_v6 = vld [vmem:[%s1223_s1 + $0x20] sm:$0xff] (!%p239_p2)  ;;  %v291_v7 = vld [vmem:[%s1223_s1 + $0x28] sm:$0xff] (!%p239_p2) }
   0x7   : > { %v875_v5 = vpack.c.bf16 (!%p239_p2), %v289_v4, %v288_v2  ;;  %v879_v8 = vpack.c.bf16 (!%p239_p2), %v291_v7, %v290_v6  ;;  %v292_v9 = vld [vmem:[%s1223_s1 + $0x30] sm:$0xff] (!%p239_p2)  ;;  %v398_v10 = vld [vmem:[%s1225_s3] sm:$0xff] (!%p239_p2)  ;;  %v399_v11 = vld [vmem:[%s1225_s3 + $0x8] sm:$0xff] (!%p239_p2) }
   0x8   : > { %872 = vmatprep.subr.bf16.mxu0 (!%p239_p2), %v871_v3  ;;  %v293_v12 = vld [vmem:[%s1223_s1 + $0x38] sm:$0xff] (!%p239_p2)  ;;  %v903_v13 = vpack.c.bf16 (!%p239_p2), %v399_v11, %v398_v10  ;;  %v400_v14 = vld [vmem:[%s1225_s3 + $0x10] sm:$0xff] (!%p239_p2)  ;;  %v402_v18 = vld [vmem:[%s1225_s3 + $0x20] sm:$0xff] (!%p239_p2) }
   0x9   : > { %874 = vmatpush3.bf16.msra.mxu0 (!%p239_p2), %v871_v3  ;;  %v401_v15 = vld [vmem:[%s1225_s3 + $0x18] sm:$0xff] (!%p239_p2)  ;;  %v403_v19 = vld [vmem:[%s1225_s3 + $0x28] sm:$0xff] (!%p239_p2)  ;;  %v883_v20 = vpack.c.bf16 (!%p239_p2), %v293_v12, %v292_v9  ;;  %v294_v21 = vld [vmem:[%s1223_s1 + $0x40] sm:$0xff] (!%p239_p2) }
   0xa   : > { %876 = vmatprep.subr.bf16.mxu0 (!%p239_p2), %v875_v5  ;;  %v907_v17 = vpack.c.bf16 (!%p239_p2), %v401_v15, %v400_v14  ;;  %904 = vmatprep.subr.bf16.mxu1 (!%p239_p2), %v903_v13  ;;  %v295_v22 = vld [vmem:[%s1223_s1 + $0x48] sm:$0xff] (!%p239_p2)  ;;  %v911_v23 = vpack.c.bf16 (!%p239_p2), %v403_v19, %v402_v18  ;;  %v404_v24 = vld [vmem:[%s1225_s3 + $0x30] sm:$0xff] (!%p239_p2)  ;;  %v405_v25 = vld [vmem:[%s1225_s3 + $0x38] sm:$0xff] (!%p239_p2) }
   0xb   : > { %906 = vmatpush3.bf16.msra.mxu1 (!%p239_p2), %v903_v13  ;;  %v887_v26 = vpack.c.bf16 (!%p239_p2), %v295_v22, %v294_v21  ;;  %v296_v27 = vld [vmem:[%s1223_s1 + $0x50] sm:$0xff] (!%p239_p2)  ;;  %v297_v28 = vld [vmem:[%s1223_s1 + $0x58] sm:$0xff] (!%p239_p2)  ;;  %v915_v29 = vpack.c.bf16 (!%p239_p2), %v405_v25, %v404_v24  ;;  %v406_v30 = vld [vmem:[%s1225_s3 + $0x40] sm:$0xff] (!%p239_p2) }
   0xc   : > { %908 = vmatprep.subr.bf16.mxu1 (!%p239_p2), %v907_v17  ;;  %v407_v31 = vld [vmem:[%s1225_s3 + $0x48] sm:$0xff] (!%p239_p2)  ;;  %v891_v32 = vpack.c.bf16 (!%p239_p2), %v297_v28, %v296_v27  ;;  %v298_v33 = vld [vmem:[%s1223_s1 + $0x60] sm:$0xff] (!%p239_p2)  ;;  %v408_v36 = vld [vmem:[%s1225_s3 + $0x50] sm:$0xff] (!%p239_p2) }
   0xd   : > { %s1231_s9 = smov (!%p271_p3, %s688_s9), 31  ;;  %878 = vmatpush3.bf16.msra.mxu0 %v875_v5  ;;  %v299_v34 = vld [vmem:[%s1223_s1 + $0x68] sm:$0xff]  ;;  %v919_v35 = vpack.c.bf16 %v407_v31, %v406_v30  ;;  %v409_v37 = vld [vmem:[%s1225_s3 + $0x58] sm:$0xff]  ;;  %v300_v39 = vld [vmem:[%s1223_s1 + $0x70] sm:$0xff] }
   0xe   : > { %s689_s18 = sshll.u32 %s1231_s9, 3  ;;  %880 = vmatprep.subr.bf16.mxu0 %v879_v8  ;;  %v895_v38 = vpack.c.bf16 %v299_v34, %v298_v33  ;;  %v301_v40 = vld [vmem:[%s1223_s1 + $0x78] sm:$0xff]  ;;  %v923_v41 = vpack.c.bf16 %v409_v37, %v408_v36  ;;  %v410_v42 = vld [vmem:[%s1225_s3 + $0x60] sm:$0xff]  ;;  %v411_v43 = vld [vmem:[%s1225_s3 + $0x68] sm:$0xff] }
   0xf   : > { %s1085_s28 = scalar_lea.vmem %s1222_s0, %s689_s18  ;;  %910 = vmatpush3.bf16.msra.mxu1 %v907_v17  ;;  %v899_v44 = vpack.c.bf16 %v301_v40, %v300_v39  ;;  %v927_v45 = vpack.c.bf16 %v411_v43, %v410_v42  ;;  %v412_v49 = vld [vmem:[%s1225_s3 + $0x70] sm:$0xff]  ;;  %v413_v50 = vld [vmem:[%s1225_s3 + $0x78] sm:$0xff]  ;;  %v510_v52 = vld [vmem:[%s1227_s5] sm:$0xff]  ;;  %s280_s13 = scalar_lea.vmem %s1229_s7, %s689_s18 }
  0x10   : > { %v282_v16 = vld [vmem:[%s1085_s28] sm:$0xff]  ;;  %912 = vmatprep.subr.bf16.mxu1 %v911_v23  ;;  %v283_v46 = vld [vmem:[%s1085_s28 + $0x8] sm:$0xff]  ;;  %v284_v47 = vld [vmem:[%s1085_s28 + $0x10] sm:$0xff]  ;;  %v931_v51 = vpack.c.bf16 %v413_v50, %v412_v49 }
  0x11   : > { %789 = vmatprep.mubr.f32.mxu0 %v282_v16  ;;  %882 = vmatpush3.bf16.msra.mxu0 %v879_v8  ;;  %v285_v48 = vld [vmem:[%s1085_s28 + $0x18] sm:$0xff]  ;;  %v511_v53 = vld [vmem:[%s1227_s5 + $0x8] sm:$0xff]  ;;  %v512_v54 = vld [vmem:[%s1227_s5 + $0x10] sm:$0xff] }
  0x12   : > { %884 = vmatprep.subr.bf16.mxu0 %v883_v20  ;;  %v935_v55 = vpack.c.bf16 %v511_v53, %v510_v52  ;;  %v513_v56 = vld [vmem:[%s1227_s5 + $0x18] sm:$0xff]  ;;  %v514_v58 = vld [vmem:[%s1227_s5 + $0x20] sm:$0xff]  ;;  %v515_v59 = vld [vmem:[%s1227_s5 + $0x28] sm:$0xff] }
  0x13   : > { %914 = vmatpush3.bf16.msra.mxu1 %v911_v23  ;;  %v939_v57 = vpack.c.bf16 %v513_v56, %v512_v54  ;;  %v943_v60 = vpack.c.bf16 %v515_v59, %v514_v58  ;;  %v516_v61 = vld [vmem:[%s1227_s5 + $0x30] sm:$0xff]  ;;  %v517_v62 = vld [vmem:[%s1227_s5 + $0x38] sm:$0xff]  ;;  %v518_v0 = vld [vmem:[%s1227_s5 + $0x40] sm:$0xff] }
  0x14   : > { %916 = vmatprep.subr.bf16.mxu1 %v915_v29  ;;  %v947_v63 = vpack.c.bf16 %v517_v62, %v516_v61  ;;  %v519_v1 = vld [vmem:[%s1227_s5 + $0x48] sm:$0xff]  ;;  %v520_v3 = vld [vmem:[%s1227_s5 + $0x50] sm:$0xff]  ;;  %v521_v4 = vld [vmem:[%s1227_s5 + $0x58] sm:$0xff] }
  0x15   : > { %886 = vmatpush3.bf16.msra.mxu0 %v883_v20  ;;  %v951_v2 = vpack.c.bf16 %v519_v1, %v518_v0  ;;  %v955_v5 = vpack.c.bf16 %v521_v4, %v520_v3  ;;  %v522_v6 = vld [vmem:[%s1227_s5 + $0x60] sm:$0xff]  ;;  %v523_v7 = vld [vmem:[%s1227_s5 + $0x68] sm:$0xff]  ;;  %v524_v22 = vld [vmem:[%s1227_s5 + $0x70] sm:$0xff] }
  0x16   : > { %888 = vmatprep.subr.bf16.mxu0 %v887_v26  ;;  %v959_v8 = vpack.c.bf16 %v523_v7, %v522_v6  ;;  %v692_v9 = vld [vmem:[%s1224_s2] ss:$0 sm:$0xff]  ;;  %v525_v23 = vld [vmem:[%s1227_s5 + $0x78] sm:$0xff] }
  0x17   : > { %918 = vmatpush3.bf16.msra.mxu1 %v915_v29  ;;  %v963_v24 = vpack.c.bf16 %v525_v23, %v524_v22  ;;  %v693_v25 = vld [vmem:[%s1226_s4] ss:$0 sm:$0xff] }
  0x18   : > { %920 = vmatprep.subr.bf16.mxu1 %v919_v35 }
  0x19   : > { %890 = vmatpush3.bf16.msra.mxu0 %v887_v26 }
  0x1a   : > { %892 = vmatprep.subr.bf16.mxu0 %v891_v32 }
  0x1b   : > { %922 = vmatpush3.bf16.msra.mxu1 %v919_v35 }
  0x1c   : > { %924 = vmatprep.subr.bf16.mxu1 %v923_v41 }
  0x1d   : > { %894 = vmatpush3.bf16.msra.mxu0 %v891_v32 }
  0x1e   : > { %896 = vmatprep.subr.bf16.mxu0 %v895_v38 }
  0x1f   : > { %926 = vmatpush3.bf16.msra.mxu1 %v923_v41 }
  0x20   : > { %928 = vmatprep.subr.bf16.mxu1 %v927_v45 }
  0x21   : > { %898 = vmatpush3.bf16.msra.mxu0 %v895_v38  ;;  %v694_v38 = vld [vmem:[%s1228_s6] ss:$0 sm:$0xff] }
  0x22   : > { %900 = vmatprep.subr.bf16.mxu0 %v899_v44 }
  0x23   : > { %930 = vmatpush3.bf16.msra.mxu1 %v927_v45 }
  0x24   : > { %932 = vmatprep.subr.bf16.mxu1 %v931_v51 }
  0x25   : > { %902 = vmatpush3.bf16.msra.mxu0 %v899_v44 }
  0x26   : > { %936 = vmatprep.subr.bf16.mxu0 %v935_v55 }
  0x27   : > { %934 = vmatpush3.bf16.msra.mxu1 %v931_v51 }
  0x28   : > { %790 = vmatmul.mubr.f32.vlgmr.msra.gmra.mrb[0].mxu0 %v283_v46  ;;  %967 = vmatprep.subr.bf16.mxu1 %v935_v55 }
  0x29   : > { %792 = vmatprep.mubr.f32.mxu0 %v284_v47  ;;  %938 = vmatpush3.bf16.msra.mxu0 %v935_v55 }
  0x2a   : > { %940 = vmatprep.subr.bf16.mxu0 %v939_v57 }
  0x2c   : > { %793 = vmatmul.mubr.f32.gmra.mrb[2].mxu0 %v285_v48 }
  0x2d   : > { %942 = vmatpush3.bf16.msra.mxu0 %v939_v57 }
  0x2e   : > { %944 = vmatprep.subr.bf16.mxu0 %v943_v60 }
  0x31   : > { %946 = vmatpush3.bf16.msra.mxu0 %v943_v60 }
  0x32   : > { %948 = vmatprep.subr.bf16.mxu0 %v947_v63 }
  0x35   : > { %950 = vmatpush3.bf16.msra.mxu0 %v947_v63 }
  0x36   : > { %952 = vmatprep.subr.bf16.mxu0 %v951_v2 }
  0x39   : > { %954 = vmatpush3.bf16.msra.mxu0 %v951_v2 }
  0x3a   : > { %956 = vmatprep.subr.bf16.mxu0 %v955_v5 }
  0x3d   : > { %958 = vmatpush3.bf16.msra.mxu0 %v955_v5 }
  0x3e   : > { %960 = vmatprep.subr.bf16.mxu0 %v959_v8 }
  0x41   : > { %962 = vmatpush3.bf16.msra.mxu0 %v959_v8 }
  0x42   : > { %964 = vmatprep.subr.bf16.mxu0 %v963_v24 }
  0x45   : > { %966 = vmatpush3.bf16.msra.mxu0 %v963_v24 }
  0xfb   : > { %v791_v10 = vpop.f32.mrb[0].mxu0 }
  0xfc   : > { %v381_v11 = vadd.f32 %v791_v10, %v692_v9  ;;  %v375_v12 = vpop.f32.mrb[1].mxu0 }
  0xfd   : > { %v376_v13 = vadd.f32 %v692_v9, %v375_v12 }
  0xfe   : > { %v395_v16 = vmax.f32 %v381_v11, 0.0 }
  0xff   : > { %v794_v14 = vpop.f32.mrb[2].mxu0  ;;  %v394_v15 = vmax.f32 %v376_v13, 0.0 }
 0x100   : > { %v391_v17 = vadd.f32 %v794_v14, %v692_v9  ;;  %v385_v18 = vpop.f32.mrb[3].mxu0 }
 0x101   : > { %v386_v19 = vadd.f32 %v692_v9, %v385_v18  ;;  %827 = vmatprep.mubr.f32.mxu1 %v394_v15 }
 0x102   : > { %828 = vmatmul.mubr.f32.vlgmr.msra.gmra.mrb[0].mxu1 %v395_v16  ;;  %v397_v21 = vmax.f32 %v391_v17, 0.0 }
 0x103   : > { %v396_v20 = vmax.f32 %v386_v19, 0.0  ;;  %975 = vmatpush3.bf16.msra.mxu1 %v935_v55 }
 0x104   : > { %968 = vmatprep.subr.bf16.mxu1 %v939_v57 }
 0x105   : > { %830 = vmatprep.mubr.f32.mxu1 %v396_v20 }
 0x106   : > { %831 = vmatmul.mubr.f32.gmra.mrb[2].mxu1 %v397_v21 }
 0x107   : > { %976 = vmatpush3.bf16.msra.mxu1 %v939_v57 }
 0x108   : > { %969 = vmatprep.subr.bf16.mxu1 %v943_v60 }
 0x10b   : > { %977 = vmatpush3.bf16.msra.mxu1 %v943_v60 }
 0x10c   : > { %970 = vmatprep.subr.bf16.mxu1 %v947_v63 }
 0x10f   : > { %978 = vmatpush3.bf16.msra.mxu1 %v947_v63 }
 0x110   : > { %971 = vmatprep.subr.bf16.mxu1 %v951_v2 }
 0x113   : > { %979 = vmatpush3.bf16.msra.mxu1 %v951_v2 }
 0x114   : > { %972 = vmatprep.subr.bf16.mxu1 %v955_v5 }
 0x117   : > { %980 = vmatpush3.bf16.msra.mxu1 %v955_v5 }
 0x118   : > { %973 = vmatprep.subr.bf16.mxu1 %v959_v8 }
 0x11b   : > { %981 = vmatpush3.bf16.msra.mxu1 %v959_v8 }
 0x11c   : > { %974 = vmatprep.subr.bf16.mxu1 %v963_v24 }
 0x11f   : > { %982 = vmatpush3.bf16.msra.mxu1 %v963_v24 }
 0x1d5   : > { %v829_v26 = vpop.f32.mrb[0].mxu1 }
 0x1d6   : > { %v493_v27 = vadd.f32 %v829_v26, %v693_v25  ;;  %v487_v28 = vpop.f32.mrb[1].mxu1 }
 0x1d7   : > { %v488_v29 = vadd.f32 %v693_v25, %v487_v28 }
 0x1d8   : > { %v507_v32 = vmax.f32 %v493_v27, 0.0 }
 0x1d9   : > { %v506_v30 = vmax.f32 %v488_v29, 0.0  ;;  %v832_v31 = vpop.f32.mrb[2].mxu1 }
 0x1da   : > { %v503_v33 = vadd.f32 %v832_v31, %v693_v25  ;;  %v497_v34 = vpop.f32.mrb[3].mxu1 }
 0x1db   : > { %v498_v35 = vadd.f32 %v693_v25, %v497_v34  ;;  %865 = vmatprep.mubr.f32.mxu0 %v506_v30 }
 0x1dc   : > { %866 = vmatmul.mubr.f32.vlgmr.msra.gmra.mrb[4].mxu0 %v507_v32  ;;  %v509_v37 = vmax.f32 %v503_v33, 0.0 }
 0x1dd   : > { %v508_v36 = vmax.f32 %v498_v35, 0.0 }
 0x1df   : > { %868 = vmatprep.mubr.f32.mxu1 %v508_v36 }
 0x1e0   : > { %869 = vmatmul.mubr.f32.vlgmr.msra.gmra.mrb[4].mxu1 %v509_v37 }
 0x2af   : > { %v867_v39 = vpop.f32.mrb[4].mxu0 }
 0x2b0   : > { %v619_v40 = vadd.f32 %v867_v39, %v694_v38  ;;  %v593_v41 = vpop.f32.mrb[5].mxu0 }
 0x2b1   : > { %v618_v42 = vadd.f32 %v694_v38, %v593_v41 }
 0x2b2   : > { %624 = vst.msk [vmem:[%s280_s13 + $0x8] sm:$0xff] %vm622_vm0, %v619_v40 }
 0x2b3   : > { %623 = vst.msk [vmem:[%s280_s13] sm:$0xff] %vm622_vm0, %v618_v42  ;;  %v870_v43 = vpop.f32.mrb[4].mxu1 }
 0x2b4   : > { %v621_v44 = vadd.f32 %v870_v43, %v694_v38  ;;  %v603_v45 = vpop.f32.mrb[5].mxu1 }
 0x2b5   : > { %v620_v46 = vadd.f32 %v694_v38, %v603_v45 }
 0x2b6   : > { %626 = vst.msk [vmem:[%s280_s13 + $0x18] sm:$0xff] %vm622_vm0, %v621_v44 }
 0x2b7   : > { %625 = vst.msk [vmem:[%s280_s13 + $0x10] sm:$0xff] %vm622_vm0, %v620_v46 }
 0x2b8 PF: > { %s17_s24 = sadd.s32 1, %s997_s24  }
 0x2b9   : > { %p14_p4 = scmp.ge.s32.totalorder %s17_s24, 10  }
 0x2bb   :  { %16 = sbr.rel (!%p14_p4) target bundleno = 1 (0x1), region = 78 }

</bundles_post_ra>
